<compile_context>
chip_gen: v7x
topology: tpu7x:2x2x1
jax: 0.10.0
libtpu: 0.0.40
codegen_flags: <defaults>
</compile_context>

<pallas_src>
import math
import numpy as np
import jax
import jax.numpy as jnp
from jax.experimental import pallas as pl
from jax.experimental.pallas import tpu as pltpu


# ----------------------------------------------------------------------------
# VMEM budget (re-derived per generation; v7x has 64 MiB physical)
# ----------------------------------------------------------------------------
def _vmem_limit():
    try:
        cap = pltpu.get_tpu_info().vmem_capacity_bytes
    except Exception:
        cap = 64 * 1024 * 1024
    return min(int(cap * 0.6), 100 * 1024 * 1024)


_VMEM_LIMIT = _vmem_limit()


# ----------------------------------------------------------------------------
# Pallas kernels
# ----------------------------------------------------------------------------

def make_encoder_kernel(L, D):
    # TODO(synk): the real module loads a pretrained BERT stack; a single
    #             deterministic encoder block stands in for the PLM here.
    scale = 1.0 / math.sqrt(D)

    def kernel(x_ref, m_ref, wq_ref, wk_ref, wv_ref, bq_ref, bk_ref, bv_ref,
               wo_ref, bo_ref, g1_ref, be1_ref, w1_ref, b1_ref, w2_ref, b2_ref,
               g2_ref, be2_ref, o_ref):
        # one grid step == one example: x [L, D], mask [1, L]
        def _ln(v, g, b):
            mu = jnp.mean(v, axis=-1, keepdims=True)
            var = jnp.mean((v - mu) ** 2, axis=-1, keepdims=True)
            return (v - mu) * jax.lax.rsqrt(var + 1e-12) * g + b

        x = x_ref[...]                                          # [L, D] f32
        xb = x.astype(jnp.bfloat16)
        # three separate projections -> no lane-offset slicing of a fused buffer
        q = jnp.dot(xb, wq_ref[...], preferred_element_type=jnp.float32) + bq_ref[...]
        k = jnp.dot(xb, wk_ref[...], preferred_element_type=jnp.float32) + bk_ref[...]
        v = jnp.dot(xb, wv_ref[...], preferred_element_type=jnp.float32) + bv_ref[...]

        qb = q.astype(jnp.bfloat16)
        kb = k.astype(jnp.bfloat16)
        vb = v.astype(jnp.bfloat16)
        # contract last axes directly (no explicit transpose of K)
        s = jax.lax.dot_general(qb, kb, (((1,), (1,)), ((), ())),
                                preferred_element_type=jnp.float32) * scale
        s = s + (m_ref[...] - 1.0) * 1e9                        # key mask [1, L]
        p = jax.nn.softmax(s, axis=-1)
        ctx = jnp.dot(p.astype(jnp.bfloat16), vb, preferred_element_type=jnp.float32)

        attn = jnp.dot(ctx.astype(jnp.bfloat16), wo_ref[...],
                       preferred_element_type=jnp.float32) + bo_ref[...]
        h = _ln(x + attn, g1_ref[...], be1_ref[...])
        ff = jnp.dot(h.astype(jnp.bfloat16), w1_ref[...],
                     preferred_element_type=jnp.float32) + b1_ref[...]
        ff = jax.nn.gelu(ff)
        ff = jnp.dot(ff.astype(jnp.bfloat16), w2_ref[...],
                     preferred_element_type=jnp.float32) + b2_ref[...]
        o_ref[...] = _ln(h + ff, g2_ref[...], be2_ref[...])
    return kernel


def maskedmean_kernel(x_ref, m_ref, w_ref, b_ref, o_ref):
    # per grid step: x [8, Ts, D], m [8, Ts, D] (mask broadcast lane-dense outside)
    x = x_ref[...]
    m = m_ref[...]
    s = jnp.sum(x * m, axis=1)                                  # [8, D]
    cnt = jnp.sum(m, axis=1)                                    # [8, D], constant per row
    pooled = s / jnp.maximum(cnt, 1.0)                          # exact divide, cnt==0 guarded
    o_ref[...] = jnp.tanh(
        jnp.dot(pooled.astype(jnp.bfloat16), w_ref[...],
                preferred_element_type=jnp.float32) + b_ref[...])


def make_bilstm_kernel(T, Np, H2):
    def kernel(x_ref, m_ref, wi_ref, wh_ref, b_ref, out_ref, h_ref, g_ref):
        # grid=(2,): d==0 forward, d==1 backward (independent -> 2 TCs on v7x).
        # Emulates torch pack_padded_sequence: padded outputs are zero, final
        # hidden = state at t=len-1 (fwd) / t=0 (bwd).
        d = pl.program_id(0)

        # hoisted input projection for this direction: one bf16 MXU pass over all rows
        g_ref[...] = (jnp.dot(x_ref[...], wi_ref[...],
                              preferred_element_type=jnp.float32) + b_ref[...])
        wh = wh_ref[...]                                        # bf16 [H2, 4H2]

        def cell(g, c):
            i_g = jax.nn.sigmoid(g[:, 0 * H2:1 * H2])
            f_g = jax.nn.sigmoid(g[:, 1 * H2:2 * H2])
            c_g = jnp.tanh(g[:, 2 * H2:3 * H2])
            o_g = jax.nn.sigmoid(g[:, 3 * H2:4 * H2])
            c_new = f_g * c + i_g * c_g
            h_new = o_g * jnp.tanh(c_new)
            return h_new, c_new

        def run(time_order):
            h = jnp.zeros((Np, H2), jnp.float32)
            c = jnp.zeros((Np, H2), jnp.float32)
            for t in time_order:                                # static, small T
                r0 = t * Np                                     # Np multiple of 8 -> aligned
                g = g_ref[r0:r0 + Np, :] + jnp.dot(
                    h.astype(jnp.bfloat16), wh, preferred_element_type=jnp.float32)
                h_new, c_new = cell(g, c)
                m = m_ref[r0:r0 + Np, :]                        # lane-dense mask [Np, H2]
                h = m * h_new + (1.0 - m) * h
                c = m * c_new + (1.0 - m) * c
                out_ref[r0:r0 + Np, :] = m * h_new              # lane-dense store
            h_ref[...] = h

        @pl.when(d == 0)
        def _():
            run(range(T))

        @pl.when(d == 1)
        def _():
            run(range(T - 1, -1, -1))
    return kernel


def cosgraph_kernel(lens_ref, dr_ref, q_ref, s_ref, lab_ref, sw_ref,
                    wq_ref, bq_ref, ws_ref, bs_ref, cos_ref, loss_ref):
    # per grid step: q [Qp, H], s [Sp, H] (Qp lane-padded to 128, Sp to 8)
    b = pl.program_id(0)
    ql = lens_ref[b, 0]
    sl = lens_ref[b, 1]
    dr = dr_ref[0]
    Sp, Qp = cos_ref.shape

    qk = jnp.dot(q_ref[...].astype(jnp.bfloat16), wq_ref[...],
                 preferred_element_type=jnp.float32) + bq_ref[...]
    sk = jnp.dot(s_ref[...].astype(jnp.bfloat16), ws_ref[...],
                 preferred_element_type=jnp.float32) + bs_ref[...]
    # contract last axes directly (no explicit transpose of qk)
    sim = jax.lax.dot_general(sk, qk, (((1,), (1,)), ((), ())),
                              preferred_element_type=jnp.float32)      # [Sp, Qp]
    qn2 = jnp.sum(qk * qk, axis=-1, keepdims=True)                     # [Qp, 1]
    sn2 = jnp.sum(sk * sk, axis=-1, keepdims=True)                     # [Sp, 1]
    inv = jax.lax.rsqrt(jnp.transpose(qn2) * sn2 + 1e-12)              # [Sp, Qp] (EUP)
    sim = jnp.maximum(sim * inv, 0.0)                                  # relu(cosine)

    iota_q = jax.lax.broadcasted_iota(jnp.int32, (Sp, Qp), 1)
    iota_s = jax.lax.broadcasted_iota(jnp.int32, (Sp, 1), 0)
    q_valid = iota_q < ql
    masked = jnp.where(q_valid, sim, jnp.float32(-1e30))
    mx = jnp.max(masked, axis=-1, keepdims=True)                       # [Sp, 1]
    iota_f = iota_q.astype(jnp.float32)
    first_idx = jnp.min(jnp.where(masked == mx, iota_f, jnp.float32(Qp)),
                        axis=-1, keepdims=True)                        # torch tie rule
    one_hot = (iota_f == first_idx).astype(jnp.float32)
    cos_new = one_hot * mx                                             # [Sp, Qp]
    cos_ref[...] = dr * cos_new + (1.0 - dr) * sw_ref[...]             # lane-dense store

    # BCE(schema_logits, schema_label), mean over valid schema rows (sl==0 guarded)
    p = jnp.clip(mx, 0.0, 1.0)
    lab = lab_ref[...]                                                 # [Sp, 1]
    bce = -(lab * jnp.maximum(jnp.log(p), -100.0)
            + (1.0 - lab) * jnp.maximum(jnp.log(1.0 - p), -100.0))
    s_valid = (iota_s < sl).astype(jnp.float32)
    total = jnp.sum(bce * s_valid, axis=0, keepdims=True)              # [1, 1]
    denom = jnp.maximum(sl, 1).astype(jnp.float32)
    loss_ref[...] = jnp.broadcast_to(total / denom, (1, 128))          # lane-padded row


# ----------------------------------------------------------------------------
# Pallas wrappers
# ----------------------------------------------------------------------------

def plm_encoder(input_ids, attention_mask, p):
    B, L = input_ids.shape
    D = p["emb"].shape[1]
    DFF = p["w1"].shape[1]
    x = p["emb"][input_ids] + p["pos"][None, :L, :]                    # [B, L, D]
    m = attention_mask.astype(jnp.float32).reshape(B, 1, L)

    def rep2(shape):
        return pl.BlockSpec(shape, lambda b: (0, 0))

    in_specs = [
        pl.BlockSpec((None, L, D), lambda b: (b, 0, 0)),               # x
        pl.BlockSpec((None, 1, L), lambda b: (b, 0, 0)),               # mask
        rep2((D, D)), rep2((D, D)), rep2((D, D)),                      # wq wk wv
        rep2((1, D)), rep2((1, D)), rep2((1, D)),                      # bq bk bv
        rep2((D, D)), rep2((1, D)),                                    # wo bo
        rep2((1, D)), rep2((1, D)),                                    # g1 be1
        rep2((D, DFF)), rep2((1, DFF)),                                # w1 b1
        rep2((DFF, D)), rep2((1, D)),                                  # w2 b2
        rep2((1, D)), rep2((1, D)),                                    # g2 be2
    ]
    out = pl.pallas_call(
        make_encoder_kernel(L, D),
        out_shape=jax.ShapeDtypeStruct((B, L, D), jnp.float32),
        grid=(B,),
        in_specs=in_specs,
        out_specs=pl.BlockSpec((None, L, D), lambda b: (b, 0, 0)),
        compiler_params=pltpu.CompilerParams(
            dimension_semantics=("parallel",), vmem_limit_bytes=_VMEM_LIMIT),
    )(x, m, p["wq"], p["wk"], p["wv"], p["bq"], p["bk"], p["bv"],
      p["wo"], p["bo"], p["g1"], p["be1"], p["w1"], p["b1"], p["w2"], p["b2"],
      p["g2"], p["be2"])
    return out.reshape(B * L, D)


def masked_mean_agg(x_sub, mask_bcast, w, b):
    Wp, Ts, D = x_sub.shape                                            # Wp multiple of 8
    wt = 8
    return pl.pallas_call(
        maskedmean_kernel,
        out_shape=jax.ShapeDtypeStruct((Wp, D), jnp.float32),
        grid=(Wp // wt,),
        in_specs=[pl.BlockSpec((wt, Ts, D), lambda i: (i, 0, 0)),
                  pl.BlockSpec((wt, Ts, D), lambda i: (i, 0, 0)),
                  pl.BlockSpec((D, D), lambda i: (0, 0)),
                  pl.BlockSpec((1, D), lambda i: (0, 0))],
        out_specs=pl.BlockSpec((wt, D), lambda i: (i, 0)),
        compiler_params=pltpu.CompilerParams(
            dimension_semantics=("parallel",), vmem_limit_bytes=_VMEM_LIMIT),
    )(x_sub, mask_bcast, w, b)


def bilstm(x, lens, p):
    # x: [N, T, D] batch-first; lens: length-N int list
    N, T, D = x.shape
    H2 = p["wh"].shape[1]
    Np = ((N + 7) // 8) * 8                                            # sublane-align rows
    xp = jnp.pad(x, ((0, Np - N), (0, 0), (0, 0)))
    x_flat = jnp.transpose(xp, (1, 0, 2)).reshape(T * Np, D).astype(jnp.bfloat16)
    lens_a = jnp.asarray(list(lens) + [0] * (Np - N), jnp.int32)
    mask = (jnp.arange(T, dtype=jnp.int32)[:, None] < lens_a[None, :]).astype(jnp.float32)
    mask_b = jnp.broadcast_to(mask.reshape(T * Np, 1), (T * Np, H2))   # lane-dense mask

    out2, h2 = pl.pallas_call(
        make_bilstm_kernel(T, Np, H2),
        out_shape=(jax.ShapeDtypeStruct((2, T * Np, H2), jnp.float32),
                   jax.ShapeDtypeStruct((2, Np, H2), jnp.float32)),
        grid=(2,),
        in_specs=[
            pl.BlockSpec((T * Np, D), lambda d: (0, 0)),
            pl.BlockSpec((T * Np, H2), lambda d: (0, 0)),
            pl.BlockSpec((None, D, 4 * H2), lambda d: (d, 0, 0)),
            pl.BlockSpec((None, H2, 4 * H2), lambda d: (d, 0, 0)),
            pl.BlockSpec((None, 1, 4 * H2), lambda d: (d, 0, 0)),
        ],
        out_specs=[
            pl.BlockSpec((None, T * Np, H2), lambda d: (d, 0, 0)),
            pl.BlockSpec((None, Np, H2), lambda d: (d, 0, 0)),
        ],
        scratch_shapes=[pltpu.VMEM((T * Np, 4 * H2), jnp.float32)],
        compiler_params=pltpu.CompilerParams(
            dimension_semantics=("parallel",), vmem_limit_bytes=_VMEM_LIMIT),
    )(x_flat, mask_b, p["wi"], p["wh"], p["b"])

    out = jnp.concatenate([out2[0], out2[1]], axis=-1)                 # [T*Np, 2H2]
    out = jnp.transpose(out.reshape(T, Np, 2 * H2), (1, 0, 2))[:N]     # [N, T, 2H2]
    h_final = jnp.concatenate([h2[0], h2[1]], axis=-1)[:N]             # [N, 2H2]
    return out, h_final


def cos_graph_and_loss(q_pad, s_pad, lab_pad, sw_pad, lens, dr_arr, wq, bq, ws, bs):
    B, Qp, H = q_pad.shape
    Sp = s_pad.shape[1]
    grid_spec = pltpu.PrefetchScalarGridSpec(
        num_scalar_prefetch=2,                                         # lens, dynamic_rate
        grid=(B,),
        in_specs=[
            pl.BlockSpec((None, Qp, H), lambda b, lens, dr: (b, 0, 0)),
            pl.BlockSpec((None, Sp, H), lambda b, lens, dr: (b, 0, 0)),
            pl.BlockSpec((None, Sp, 1), lambda b, lens, dr: (b, 0, 0)),
            pl.BlockSpec((None, Sp, Qp), lambda b, lens, dr: (b, 0, 0)),
            pl.BlockSpec((H, H), lambda b, lens, dr: (0, 0)),
            pl.BlockSpec((1, H), lambda b, lens, dr: (0, 0)),
            pl.BlockSpec((H, H), lambda b, lens, dr: (0, 0)),
            pl.BlockSpec((1, H), lambda b, lens, dr: (0, 0)),
        ],
        out_specs=[
            pl.BlockSpec((None, Sp, Qp), lambda b, lens, dr: (b, 0, 0)),
            pl.BlockSpec((None, 1, 128), lambda b, lens, dr: (b, 0, 0)),
        ],
    )
    cos_new, losses = pl.pallas_call(
        cosgraph_kernel,
        out_shape=(jax.ShapeDtypeStruct((B, Sp, Qp), jnp.float32),
                   jax.ShapeDtypeStruct((B, 1, 128), jnp.float32)),
        grid_spec=grid_spec,
        compiler_params=pltpu.CompilerParams(
            dimension_semantics=("parallel",), vmem_limit_bytes=_VMEM_LIMIT),
    )(lens, dr_arr, q_pad, s_pad, lab_pad, sw_pad, wq, bq, ws, bs)
    return cos_new, losses


# ----------------------------------------------------------------------------
# Forward pass (GraphInputLayerPLM.forward equivalent)
# ----------------------------------------------------------------------------

def graph_input_layer_plm_forward(params, batch):
    B = batch["input_ids"].shape[0]
    H = params["hidden"]
    dr = batch["dynamic_rate"]

    # ---- PLM ----  (token_type_ids simply not constructed/used)
    out_flat = plm_encoder(batch["input_ids"], batch["attention_mask"], params["plm"])
    D = out_flat.shape[-1]

    # ---- SubwordAggregation: one batched masked-mean kernel over all word groups ----
    def pad_sub(idx, mask, Ts):
        pad = Ts - idx.shape[1]
        return (jnp.pad(idx, ((0, 0), (0, pad))), jnp.pad(mask, ((0, 0), (0, pad))))

    nq = batch["q_gather_idx"].shape[0]
    nt = batch["t_gather_idx"].shape[0]
    nc = batch["c_gather_idx"].shape[0]
    Ts = max(batch["q_gather_idx"].shape[1], batch["t_gather_idx"].shape[1],
             batch["c_gather_idx"].shape[1])
    q_idx, q_m = pad_sub(batch["q_gather_idx"], batch["q_sub_mask"], Ts)
    t_idx, t_m = pad_sub(batch["t_gather_idx"], batch["t_sub_mask"], Ts)
    c_idx, c_m = pad_sub(batch["c_gather_idx"], batch["c_sub_mask"], Ts)
    idx_all = jnp.concatenate([q_idx, t_idx, c_idx], axis=0)
    m_all = jnp.concatenate([q_m, t_m, c_m], axis=0)
    Wtot = idx_all.shape[0]
    Wp = ((Wtot + 7) // 8) * 8
    idx_all = jnp.pad(idx_all, ((0, Wp - Wtot), (0, 0)))
    m_all = jnp.pad(m_all, ((0, Wp - Wtot), (0, 0)))
    sub_all = out_flat[idx_all]                                        # [Wp, Ts, D] gather
    m_bcast = jnp.broadcast_to(m_all[:, :, None], (Wp, Ts, D))
    words_all = masked_mean_agg(sub_all, m_bcast, params["agg_w"], params["agg_b"])
    q_words = words_all[:nq]
    t_words = words_all[nq:nq + nt]
    c_words = words_all[nq + nt:nq + nt + nc]

    new_questions = jnp.zeros((B, batch["max_q_len"], D), jnp.float32).at[
        batch["q_scatter"][:, 0], batch["q_scatter"][:, 1]].set(q_words)
    new_tables = jnp.zeros((batch["num_tables"], batch["max_t_word_len"], D), jnp.float32).at[
        batch["t_scatter"][:, 0], batch["t_scatter"][:, 1]].set(t_words)
    new_columns = jnp.zeros((batch["num_columns"], batch["max_c_word_len"], D), jnp.float32).at[
        batch["c_scatter"][:, 0], batch["c_scatter"][:, 1]].set(c_words)
    # table_batch / column_batch (returned by SubwordAggregation, unused downstream)
    _tables_batch = jnp.zeros((B, batch["max_t_total_len"], D), jnp.float32).at[
        batch["t_batch_scatter"][:, 0], batch["t_batch_scatter"][:, 1]].set(t_words)
    _columns_batch = jnp.zeros((B, batch["max_c_total_len"], D), jnp.float32).at[
        batch["c_batch_scatter"][:, 0], batch["c_batch_scatter"][:, 1]].set(c_words)

    # dropout p=0.0 -> identity

    # ---- InputRNNLayer (head+tail schema aggregation) ----
    q_out_full, _ = bilstm(new_questions, batch["question_lens"], params["q_lstm"])

    # batch the two schema LSTM calls (shared s_lstm weights): pad to common T, concat N
    Tw = max(batch["max_t_word_len"], batch["max_c_word_len"])

    def pad_T(a):
        return jnp.pad(a, ((0, 0), (0, Tw - a.shape[1]), (0, 0)))

    schema_in = jnp.concatenate([pad_T(new_tables), pad_T(new_columns)], axis=0)
    schema_lens = list(batch["table_word_lens"]) + list(batch["column_word_lens"])
    _, schema_h = bilstm(schema_in, schema_lens, params["s_lstm"])
    tables = schema_h[:batch["num_tables"]]
    columns = schema_h[batch["num_tables"]:]

    q_pack = batch["q_pack"]
    questions_packed = q_out_full[q_pack[:, 0], q_pack[:, 1]]          # [sum_q, H]

    q_lens = batch["question_lens"]
    t_lens = batch["table_lens"]
    c_lens = batch["column_lens"]
    q_off = np.cumsum([0] + list(q_lens))
    t_off = np.cumsum([0] + list(t_lens))
    c_off = np.cumsum([0] + list(c_lens))

    node_list, s_list = [], []
    max_s = max(t + c for t, c in zip(t_lens, c_lens))
    for b in range(B):
        q_b = questions_packed[q_off[b]:q_off[b + 1]]
        t_b = tables[t_off[b]:t_off[b + 1]]
        c_b = columns[c_off[b]:c_off[b + 1]]
        node_list += [q_b, t_b, c_b]
        pad = jnp.zeros((max_s - t_b.shape[0] - c_b.shape[0], H), jnp.float32)
        s_list.append(jnp.concatenate([t_b, c_b, pad], axis=0))
    inputs_nodes = jnp.concatenate(node_list, axis=0)
    q_outputs = q_out_full                                             # zero at padded positions
    s_outputs = jnp.stack(s_list, axis=0)

    # ---- optimize_graph branch (fused cosine-sim + max/argmax + BCE + blend) ----
    S = s_outputs.shape[1]
    Q = q_outputs.shape[1]
    Sp = ((S + 7) // 8) * 8                                            # sublane pad
    Qp = ((Q + 127) // 128) * 128                                      # lane-dense cos output
    q_pad = jnp.pad(q_outputs, ((0, 0), (0, Qp - Q), (0, 0)))
    s_pad = jnp.pad(s_outputs, ((0, 0), (0, Sp - S), (0, 0)))

    lab_pad = np.zeros((B, Sp, 1), np.float32)
    sw_pad = np.zeros((B, Sp, Qp), np.float32)
    lens_arr = np.zeros((B, 2), np.int32)
    for b in range(B):
        sl = int(t_lens[b] + c_lens[b])
        ql = int(q_lens[b])
        lab_pad[b, :sl, 0] = np.asarray(batch["schema_labels"][b][:sl], np.float32)
        sw_pad[b, :sl, :ql] = np.asarray(batch["schema_weight"][b], np.float32).T
        lens_arr[b] = (ql, sl)

    cos_new, losses = cos_graph_and_loss(
        q_pad, s_pad, jnp.asarray(lab_pad), jnp.asarray(sw_pad),
        jnp.asarray(lens_arr), jnp.asarray([dr], jnp.float32),
        params["wq_trans"], params["bq_trans"], params["ws_trans"], params["bs_trans"])
    loss = jnp.sum(losses[:, 0, 0])

    # per-example block-matrix assembly (variable shapes -> host glue)
    q_s_sims = []
    for b in range(B):
        ql = int(q_lens[b])
        sl = int(t_lens[b] + c_lens[b])
        cos_b = cos_new[b, :sl, :ql]
        up = jnp.concatenate([jnp.zeros((ql, ql), jnp.float32), cos_b.T], axis=1)
        dn = jnp.concatenate([cos_b, jnp.zeros((sl, sl), jnp.float32)], axis=1)
        q_s_sims.append(jnp.concatenate([up, dn], axis=0))

    # filter_edge=False -> semantic lists stay empty
    return inputs_nodes, loss, ([], []), q_s_sims


# ----------------------------------------------------------------------------
# Deterministic parameters + synthetic batch
# ----------------------------------------------------------------------------

def make_params(key, vocab, L, d_plm, dff, hidden):
    h2 = hidden // 2
    keys = iter(jax.random.split(key, 64))

    def mat(shape, scale=0.1):
        return scale * jax.random.normal(next(keys), shape, jnp.float32)

    def bmat(shape, scale=0.1):                                        # bf16 MXU weights
        return mat(shape, scale).astype(jnp.bfloat16)

    plm = dict(
        emb=mat((vocab, d_plm)), pos=mat((L, d_plm)),
        wq=bmat((d_plm, d_plm)), wk=bmat((d_plm, d_plm)), wv=bmat((d_plm, d_plm)),
        bq=mat((1, d_plm)), bk=mat((1, d_plm)), bv=mat((1, d_plm)),
        wo=bmat((d_plm, d_plm)), bo=mat((1, d_plm)),
        g1=jnp.ones((1, d_plm), jnp.float32), be1=jnp.zeros((1, d_plm), jnp.float32),
        w1=bmat((d_plm, dff)), b1=mat((1, dff)),
        w2=bmat((dff, d_plm)), b2=mat((1, d_plm)),
        g2=jnp.ones((1, d_plm), jnp.float32), be2=jnp.zeros((1, d_plm), jnp.float32),
    )

    def lstm_params():
        # direction-stacked weights: [2, ...] so grid=(2,) picks its block per TC
        return dict(
            wi=jnp.stack([bmat((d_plm, 4 * h2)), bmat((d_plm, 4 * h2))], axis=0),
            wh=jnp.stack([bmat((h2, 4 * h2)), bmat((h2, 4 * h2))], axis=0),
            b=jnp.stack([mat((1, 4 * h2)), mat((1, 4 * h2))], axis=0),
        )

    return dict(
        hidden=hidden,
        plm=plm,
        agg_w=bmat((d_plm, d_plm)), agg_b=mat((1, d_plm)),
        q_lstm=lstm_params(),
        s_lstm=lstm_params(),          # share_lstm=False -> separate weights
        wq_trans=bmat((hidden, hidden)), bq_trans=mat((1, hidden)),
        ws_trans=bmat((hidden, hidden)), bs_trans=mat((1, hidden)),
    )


def build_gather(pos_lists, L, max_sub):
    n = len(pos_lists)
    idx = np.zeros((n, max_sub), np.int32)
    mask = np.zeros((n, max_sub), np.float32)
    for i, plist in enumerate(pos_lists):
        for j, (b, p) in enumerate(plist):
            idx[i, j] = b * L + p
            mask[i, j] = 1.0
    return jnp.asarray(idx), jnp.asarray(mask)


def make_batch(key, L):
    B = 2
    # PLM token layout: [CLS] q-subwords [SEP] table-subwords column-subwords [SEP] pad
    q_pos = [[(0, 1)], [(0, 2), (0, 3)], [(0, 4)], [(0, 5)],
             [(1, 1), (1, 2)], [(1, 3)], [(1, 4)]]
    t_pos = [[(0, 7)], [(0, 8)], [(0, 9), (0, 10)], [(1, 6)]]
    c_pos = [[(0, 11)], [(0, 12)], [(0, 13)], [(0, 14), (0, 15)],
             [(1, 7)], [(1, 8), (1, 9), (1, 10)]]

    q_gather_idx, q_sub_mask = build_gather(q_pos, L, 2)
    t_gather_idx, t_sub_mask = build_gather(t_pos, L, 2)
    c_gather_idx, c_sub_mask = build_gather(c_pos, L, 3)

    attention_mask = np.zeros((B, L), np.float32)
    attention_mask[0, :17] = 1.0
    attention_mask[1, :12] = 1.0
    input_ids = jax.random.randint(key, (B, L), 0, 50, jnp.int32)

    rs = np.random.RandomState(0)
    batch = dict(
        input_ids=input_ids,
        attention_mask=jnp.asarray(attention_mask),
        q_gather_idx=q_gather_idx, q_sub_mask=q_sub_mask,
        t_gather_idx=t_gather_idx, t_sub_mask=t_sub_mask,
        c_gather_idx=c_gather_idx, c_sub_mask=c_sub_mask,
        # word-rep scatter targets
        q_scatter=np.array([(0, 0), (0, 1), (0, 2), (0, 3), (1, 0), (1, 1), (1, 2)], np.int32),
        t_scatter=np.array([(0, 0), (0, 1), (1, 0), (2, 0)], np.int32),
        c_scatter=np.array([(0, 0), (1, 0), (1, 1), (2, 0), (3, 0), (4, 0)], np.int32),
        t_batch_scatter=np.array([(0, 0), (0, 1), (0, 2), (1, 0)], np.int32),
        c_batch_scatter=np.array([(0, 0), (0, 1), (0, 2), (0, 3), (1, 0), (1, 1)], np.int32),
        q_pack=np.array([(0, 0), (0, 1), (0, 2), (0, 3), (1, 0), (1, 1), (1, 2)], np.int32),
        max_q_len=4, num_tables=3, max_t_word_len=2, num_columns=5, max_c_word_len=2,
        max_t_total_len=3, max_c_total_len=4,
        question_lens=[4, 3],
        table_lens=[2, 1], column_lens=[3, 2],
        table_word_lens=[2, 1, 1],
        column_word_lens=[1, 2, 1, 1, 1],
        schema_labels=[np.array([1, 0, 1, 0, 1], np.int32),
                       np.array([0, 1, 1], np.int32)],
        schema_weight=[rs.rand(4, 5).astype(np.float32),
                       rs.rand(3, 3).astype(np.float32)],
        dynamic_rate=0.7,
    )
    return batch


if __name__ == "__main__":
    # L multiple of 8 (sublane alignment); D_PLM / HIDDEN chosen lane-dense (>=128)
    # so every matmul operand/output sits on full 128-lane tiles while staying small.
    L, D_PLM, DFF, HIDDEN, VOCAB = 24, 128, 256, 256, 50
    root = jax.random.PRNGKey(0)
    k_params, k_batch = jax.random.split(root)
    params = make_params(k_params, VOCAB, L, D_PLM, DFF, HIDDEN)
    batch = make_batch(k_batch, L)

    inputs_nodes, loss, semantics, q_s_sims = graph_input_layer_plm_forward(params, batch)
    jax.block_until_ready((inputs_nodes, loss, q_s_sims))

    assert inputs_nodes.shape == (15, HIDDEN)
    assert q_s_sims[0].shape == (9, 9) and q_s_sims[1].shape == (6, 6)
    assert np.isfinite(float(loss))
    print("KERNEL_OK")
</pallas_src>

<mosaic_0001>
module attributes {stable_mosaic.version = 11 : i64} {
  func.func @kernel(%arg0: i32, %arg1: memref<1x24x128xf32, #tpu.memory_space<vmem>>, %arg2: memref<1x1x24xf32, #tpu.memory_space<vmem>>, %arg3: memref<128x128xbf16, #tpu.memory_space<vmem>>, %arg4: memref<128x128xbf16, #tpu.memory_space<vmem>>, %arg5: memref<128x128xbf16, #tpu.memory_space<vmem>>, %arg6: memref<1x128xf32, #tpu.memory_space<vmem>>, %arg7: memref<1x128xf32, #tpu.memory_space<vmem>>, %arg8: memref<1x128xf32, #tpu.memory_space<vmem>>, %arg9: memref<128x128xbf16, #tpu.memory_space<vmem>>, %arg10: memref<1x128xf32, #tpu.memory_space<vmem>>, %arg11: memref<1x128xf32, #tpu.memory_space<vmem>>, %arg12: memref<1x128xf32, #tpu.memory_space<vmem>>, %arg13: memref<128x256xbf16, #tpu.memory_space<vmem>>, %arg14: memref<1x256xf32, #tpu.memory_space<vmem>>, %arg15: memref<256x128xbf16, #tpu.memory_space<vmem>>, %arg16: memref<1x128xf32, #tpu.memory_space<vmem>>, %arg17: memref<1x128xf32, #tpu.memory_space<vmem>>, %arg18: memref<1x128xf32, #tpu.memory_space<vmem>>, %arg19: memref<1x24x128xf32, #tpu.memory_space<vmem>>) attributes {dimension_semantics = [#tpu.dimension_semantics<parallel>], iteration_bounds = array<i64: 2>, scalar_prefetch = 0 : i64, scratch_operands = 0 : i64, tpu.core_type = #tpu.core_type<tc>, window_params = [{transform_indices = @transform_0, window_bounds = array<i64: 1, 24, 128>}, {transform_indices = @transform_1, window_bounds = array<i64: 1, 1, 24>}, {pipeline_mode = #tpu.pipeline_mode<synchronous>, transform_indices = @transform_2, window_bounds = array<i64: 128, 128>}, {pipeline_mode = #tpu.pipeline_mode<synchronous>, transform_indices = @transform_3, window_bounds = array<i64: 128, 128>}, {pipeline_mode = #tpu.pipeline_mode<synchronous>, transform_indices = @transform_4, window_bounds = array<i64: 128, 128>}, {pipeline_mode = #tpu.pipeline_mode<synchronous>, transform_indices = @transform_5, window_bounds = array<i64: 1, 128>}, {pipeline_mode = #tpu.pipeline_mode<synchronous>, transform_indices = @transform_6, window_bounds = array<i64: 1, 128>}, {pipeline_mode = #tpu.pipeline_mode<synchronous>, transform_indices = @transform_7, window_bounds = array<i64: 1, 128>}, {pipeline_mode = #tpu.pipeline_mode<synchronous>, transform_indices = @transform_8, window_bounds = array<i64: 128, 128>}, {pipeline_mode = #tpu.pipeline_mode<synchronous>, transform_indices = @transform_9, window_bounds = array<i64: 1, 128>}, {pipeline_mode = #tpu.pipeline_mode<synchronous>, transform_indices = @transform_10, window_bounds = array<i64: 1, 128>}, {pipeline_mode = #tpu.pipeline_mode<synchronous>, transform_indices = @transform_11, window_bounds = array<i64: 1, 128>}, {pipeline_mode = #tpu.pipeline_mode<synchronous>, transform_indices = @transform_12, window_bounds = array<i64: 128, 256>}, {pipeline_mode = #tpu.pipeline_mode<synchronous>, transform_indices = @transform_13, window_bounds = array<i64: 1, 256>}, {pipeline_mode = #tpu.pipeline_mode<synchronous>, transform_indices = @transform_14, window_bounds = array<i64: 256, 128>}, {pipeline_mode = #tpu.pipeline_mode<synchronous>, transform_indices = @transform_15, window_bounds = array<i64: 1, 128>}, {pipeline_mode = #tpu.pipeline_mode<synchronous>, transform_indices = @transform_16, window_bounds = array<i64: 1, 128>}, {pipeline_mode = #tpu.pipeline_mode<synchronous>, transform_indices = @transform_17, window_bounds = array<i64: 1, 128>}, {transform_indices = @transform_18, window_bounds = array<i64: 1, 24, 128>}]} {
    %c0 = arith.constant 0 : index
    %c0_0 = arith.constant 0 : index
    %c0_1 = arith.constant 0 : index
    %0 = vector.load %arg1[%c0, %c0_0, %c0_1] : memref<1x24x128xf32, #tpu.memory_space<vmem>>, vector<1x24x128xf32>
    %1 = vector.shape_cast %0 : vector<1x24x128xf32> to vector<24x128xf32>
    %2 = arith.truncf %1 : vector<24x128xf32> to vector<24x128xbf16>
    %c0_2 = arith.constant 0 : index
    %c0_3 = arith.constant 0 : index
    %3 = vector.load %arg3[%c0_2, %c0_3] : memref<128x128xbf16, #tpu.memory_space<vmem>>, vector<128x128xbf16>
    %cst = arith.constant dense<0.000000e+00> : vector<24x128xf32>
    %4 = tpu.matmul %2, %3, %cst {dimension_numbers = #tpu.dot_dimension_numbers<[1], [0], [0], [1], [0, 0, 1, 1], [], []>} : vector<24x128xbf16>, vector<128x128xbf16>, vector<24x128xf32> -> vector<24x128xf32>
    %c0_4 = arith.constant 0 : index
    %c0_5 = arith.constant 0 : index
    %5 = vector.load %arg6[%c0_4, %c0_5] : memref<1x128xf32, #tpu.memory_space<vmem>>, vector<1x128xf32>
    %6 = vector.broadcast %5 : vector<1x128xf32> to vector<24x128xf32>
    %7 = arith.addf %4, %6 : vector<24x128xf32>
    %c0_6 = arith.constant 0 : index
    %c0_7 = arith.constant 0 : index
    %8 = vector.load %arg4[%c0_6, %c0_7] : memref<128x128xbf16, #tpu.memory_space<vmem>>, vector<128x128xbf16>
    %cst_8 = arith.constant dense<0.000000e+00> : vector<24x128xf32>
    %9 = tpu.matmul %2, %8, %cst_8 {dimension_numbers = #tpu.dot_dimension_numbers<[1], [0], [0], [1], [0, 0, 1, 1], [], []>} : vector<24x128xbf16>, vector<128x128xbf16>, vector<24x128xf32> -> vector<24x128xf32>
    %c0_9 = arith.constant 0 : index
    %c0_10 = arith.constant 0 : index
    %10 = vector.load %arg7[%c0_9, %c0_10] : memref<1x128xf32, #tpu.memory_space<vmem>>, vector<1x128xf32>
    %11 = vector.broadcast %10 : vector<1x128xf32> to vector<24x128xf32>
    %12 = arith.addf %9, %11 : vector<24x128xf32>
    %c0_11 = arith.constant 0 : index
    %c0_12 = arith.constant 0 : index
    %13 = vector.load %arg5[%c0_11, %c0_12] : memref<128x128xbf16, #tpu.memory_space<vmem>>, vector<128x128xbf16>
    %cst_13 = arith.constant dense<0.000000e+00> : vector<24x128xf32>
    %14 = tpu.matmul %2, %13, %cst_13 {dimension_numbers = #tpu.dot_dimension_numbers<[1], [0], [0], [1], [0, 0, 1, 1], [], []>} : vector<24x128xbf16>, vector<128x128xbf16>, vector<24x128xf32> -> vector<24x128xf32>
    %c0_14 = arith.constant 0 : index
    %c0_15 = arith.constant 0 : index
    %15 = vector.load %arg8[%c0_14, %c0_15] : memref<1x128xf32, #tpu.memory_space<vmem>>, vector<1x128xf32>
    %16 = vector.broadcast %15 : vector<1x128xf32> to vector<24x128xf32>
    %17 = arith.addf %14, %16 : vector<24x128xf32>
    %18 = arith.truncf %7 : vector<24x128xf32> to vector<24x128xbf16>
    %19 = arith.truncf %12 : vector<24x128xf32> to vector<24x128xbf16>
    %20 = arith.truncf %17 : vector<24x128xf32> to vector<24x128xbf16>
    %cst_16 = arith.constant dense<0.000000e+00> : vector<24x24xf32>
    %21 = tpu.matmul %18, %19, %cst_16 {dimension_numbers = #tpu.dot_dimension_numbers<[1], [1], [0], [0], [0, 0, 1, 0], [], []>} : vector<24x128xbf16>, vector<24x128xbf16>, vector<24x24xf32> -> vector<24x24xf32>
    %cst_17 = arith.constant 0.0883883461 : f32
    %22 = vector.broadcast %cst_17 : f32 to vector<24x24xf32>
    %23 = arith.mulf %21, %22 : vector<24x24xf32>
    %c0_18 = arith.constant 0 : index
    %c0_19 = arith.constant 0 : index
    %c0_20 = arith.constant 0 : index
    %24 = vector.load %arg2[%c0_18, %c0_19, %c0_20] : memref<1x1x24xf32, #tpu.memory_space<vmem>>, vector<1x1x24xf32>
    %25 = vector.shape_cast %24 : vector<1x1x24xf32> to vector<1x24xf32>
    %cst_21 = arith.constant 1.000000e+00 : f32
    %26 = vector.broadcast %cst_21 : f32 to vector<1x24xf32>
    %27 = arith.subf %25, %26 : vector<1x24xf32>
    %cst_22 = arith.constant 1.000000e+09 : f32
    %28 = vector.broadcast %cst_22 : f32 to vector<1x24xf32>
    %29 = arith.mulf %27, %28 : vector<1x24xf32>
    %30 = vector.broadcast %29 : vector<1x24xf32> to vector<24x24xf32>
    %31 = arith.addf %23, %30 : vector<24x24xf32>
    %cst_23 = arith.constant dense<0xFF800000> : vector<24xf32>
    %32 = vector.multi_reduction <maximumf>, %31, %cst_23 [1] : vector<24x24xf32> to vector<24xf32>
    %cst_24 = arith.constant 0xFF800000 : f32
    %33 = vector.broadcast %cst_24 : f32 to vector<24xf32>
    %34 = arith.maximumf %33, %32 : vector<24xf32>
    %35 = vector.shape_cast %34 : vector<24xf32> to vector<24x1xf32>
    %36 = vector.broadcast %35 : vector<24x1xf32> to vector<24x24xf32>
    %37 = arith.subf %31, %36 : vector<24x24xf32>
    %38 = math.exp %37 : vector<24x24xf32>
    %cst_25 = arith.constant dense<0.000000e+00> : vector<24xf32>
    %39 = vector.multi_reduction <add>, %38, %cst_25 [1] : vector<24x24xf32> to vector<24xf32>
    %40 = vector.shape_cast %39 : vector<24xf32> to vector<24x1xf32>
    %41 = vector.broadcast %40 : vector<24x1xf32> to vector<24x24xf32>
    %42 = arith.divf %38, %41 : vector<24x24xf32>
    %43 = arith.truncf %42 : vector<24x24xf32> to vector<24x24xbf16>
    %cst_26 = arith.constant dense<0.000000e+00> : vector<24x128xf32>
    %44 = tpu.matmul %43, %20, %cst_26 {dimension_numbers = #tpu.dot_dimension_numbers<[1], [0], [0], [1], [0, 0, 1, 1], [], []>} : vector<24x24xbf16>, vector<24x128xbf16>, vector<24x128xf32> -> vector<24x128xf32>
    %45 = arith.truncf %44 : vector<24x128xf32> to vector<24x128xbf16>
    %c0_27 = arith.constant 0 : index
    %c0_28 = arith.constant 0 : index
    %46 = vector.load %arg9[%c0_27, %c0_28] : memref<128x128xbf16, #tpu.memory_space<vmem>>, vector<128x128xbf16>
    %cst_29 = arith.constant dense<0.000000e+00> : vector<24x128xf32>
    %47 = tpu.matmul %45, %46, %cst_29 {dimension_numbers = #tpu.dot_dimension_numbers<[1], [0], [0], [1], [0, 0, 1, 1], [], []>} : vector<24x128xbf16>, vector<128x128xbf16>, vector<24x128xf32> -> vector<24x128xf32>
    %c0_30 = arith.constant 0 : index
    %c0_31 = arith.constant 0 : index
    %48 = vector.load %arg10[%c0_30, %c0_31] : memref<1x128xf32, #tpu.memory_space<vmem>>, vector<1x128xf32>
    %49 = vector.broadcast %48 : vector<1x128xf32> to vector<24x128xf32>
    %50 = arith.addf %47, %49 : vector<24x128xf32>
    %51 = arith.addf %1, %50 : vector<24x128xf32>
    %c0_32 = arith.constant 0 : index
    %c0_33 = arith.constant 0 : index
    %52 = vector.load %arg11[%c0_32, %c0_33] : memref<1x128xf32, #tpu.memory_space<vmem>>, vector<1x128xf32>
    %c0_34 = arith.constant 0 : index
    %c0_35 = arith.constant 0 : index
    %53 = vector.load %arg12[%c0_34, %c0_35] : memref<1x128xf32, #tpu.memory_space<vmem>>, vector<1x128xf32>
    %cst_36 = arith.constant dense<0.000000e+00> : vector<24xf32>
    %54 = vector.multi_reduction <add>, %51, %cst_36 [1] : vector<24x128xf32> to vector<24xf32>
    %55 = vector.shape_cast %54 : vector<24xf32> to vector<24x1xf32>
    %cst_37 = arith.constant 1.280000e+02 : f32
    %56 = vector.broadcast %cst_37 : f32 to vector<24x1xf32>
    %57 = arith.divf %55, %56 : vector<24x1xf32>
    %58 = vector.broadcast %57 : vector<24x1xf32> to vector<24x128xf32>
    %59 = arith.subf %51, %58 : vector<24x128xf32>
    %60 = arith.mulf %59, %59 : vector<24x128xf32>
    %cst_38 = arith.constant dense<0.000000e+00> : vector<24xf32>
    %61 = vector.multi_reduction <add>, %60, %cst_38 [1] : vector<24x128xf32> to vector<24xf32>
    %62 = vector.shape_cast %61 : vector<24xf32> to vector<24x1xf32>
    %cst_39 = arith.constant 1.280000e+02 : f32
    %63 = vector.broadcast %cst_39 : f32 to vector<24x1xf32>
    %64 = arith.divf %62, %63 : vector<24x1xf32>
    %65 = vector.broadcast %57 : vector<24x1xf32> to vector<24x128xf32>
    %66 = arith.subf %51, %65 : vector<24x128xf32>
    %cst_40 = arith.constant 9.99999996E-13 : f32
    %67 = vector.broadcast %cst_40 : f32 to vector<24x1xf32>
    %68 = arith.addf %64, %67 : vector<24x1xf32>
    %69 = math.rsqrt %68 : vector<24x1xf32>
    %70 = vector.broadcast %69 : vector<24x1xf32> to vector<24x128xf32>
    %71 = arith.mulf %66, %70 : vector<24x128xf32>
    %72 = vector.broadcast %52 : vector<1x128xf32> to vector<24x128xf32>
    %73 = arith.mulf %71, %72 : vector<24x128xf32>
    %74 = vector.broadcast %53 : vector<1x128xf32> to vector<24x128xf32>
    %75 = arith.addf %73, %74 : vector<24x128xf32>
    %76 = arith.truncf %75 : vector<24x128xf32> to vector<24x128xbf16>
    %c0_41 = arith.constant 0 : index
    %c0_42 = arith.constant 0 : index
    %77 = vector.load %arg13[%c0_41, %c0_42] : memref<128x256xbf16, #tpu.memory_space<vmem>>, vector<128x256xbf16>
    %cst_43 = arith.constant dense<0.000000e+00> : vector<24x256xf32>
    %78 = tpu.matmul %76, %77, %cst_43 {dimension_numbers = #tpu.dot_dimension_numbers<[1], [0], [0], [1], [0, 0, 1, 1], [], []>} : vector<24x128xbf16>, vector<128x256xbf16>, vector<24x256xf32> -> vector<24x256xf32>
    %c0_44 = arith.constant 0 : index
    %c0_45 = arith.constant 0 : index
    %79 = vector.load %arg14[%c0_44, %c0_45] : memref<1x256xf32, #tpu.memory_space<vmem>>, vector<1x256xf32>
    %80 = vector.broadcast %79 : vector<1x256xf32> to vector<24x256xf32>
    %81 = arith.addf %78, %80 : vector<24x256xf32>
    %82 = arith.mulf %81, %81 : vector<24x256xf32>
    %83 = arith.mulf %81, %82 : vector<24x256xf32>
    %cst_46 = arith.constant 4.471500e-02 : f32
    %84 = vector.broadcast %cst_46 : f32 to vector<24x256xf32>
    %85 = arith.mulf %84, %83 : vector<24x256xf32>
    %86 = arith.addf %81, %85 : vector<24x256xf32>
    %cst_47 = arith.constant 0.797884583 : f32
    %87 = vector.broadcast %cst_47 : f32 to vector<24x256xf32>
    %88 = arith.mulf %87, %86 : vector<24x256xf32>
    %89 = math.tanh %88 : vector<24x256xf32>
    %cst_48 = arith.constant 1.000000e+00 : f32
    %90 = vector.broadcast %cst_48 : f32 to vector<24x256xf32>
    %91 = arith.addf %90, %89 : vector<24x256xf32>
    %cst_49 = arith.constant 5.000000e-01 : f32
    %92 = vector.broadcast %cst_49 : f32 to vector<24x256xf32>
    %93 = arith.mulf %92, %91 : vector<24x256xf32>
    %94 = arith.mulf %81, %93 : vector<24x256xf32>
    %95 = arith.truncf %94 : vector<24x256xf32> to vector<24x256xbf16>
    %c0_50 = arith.constant 0 : index
    %c0_51 = arith.constant 0 : index
    %96 = vector.load %arg15[%c0_50, %c0_51] : memref<256x128xbf16, #tpu.memory_space<vmem>>, vector<256x128xbf16>
    %cst_52 = arith.constant dense<0.000000e+00> : vector<24x128xf32>
    %97 = tpu.matmul %95, %96, %cst_52 {dimension_numbers = #tpu.dot_dimension_numbers<[1], [0], [0], [1], [0, 0, 1, 1], [], []>} : vector<24x256xbf16>, vector<256x128xbf16>, vector<24x128xf32> -> vector<24x128xf32>
    %c0_53 = arith.constant 0 : index
    %c0_54 = arith.constant 0 : index
    %98 = vector.load %arg16[%c0_53, %c0_54] : memref<1x128xf32, #tpu.memory_space<vmem>>, vector<1x128xf32>
    %99 = vector.broadcast %98 : vector<1x128xf32> to vector<24x128xf32>
    %100 = arith.addf %97, %99 : vector<24x128xf32>
    %101 = arith.addf %75, %100 : vector<24x128xf32>
    %c0_55 = arith.constant 0 : index
    %c0_56 = arith.constant 0 : index
    %102 = vector.load %arg17[%c0_55, %c0_56] : memref<1x128xf32, #tpu.memory_space<vmem>>, vector<1x128xf32>
    %c0_57 = arith.constant 0 : index
    %c0_58 = arith.constant 0 : index
    %103 = vector.load %arg18[%c0_57, %c0_58] : memref<1x128xf32, #tpu.memory_space<vmem>>, vector<1x128xf32>
    %cst_59 = arith.constant dense<0.000000e+00> : vector<24xf32>
    %104 = vector.multi_reduction <add>, %101, %cst_59 [1] : vector<24x128xf32> to vector<24xf32>
    %105 = vector.shape_cast %104 : vector<24xf32> to vector<24x1xf32>
    %cst_60 = arith.constant 1.280000e+02 : f32
    %106 = vector.broadcast %cst_60 : f32 to vector<24x1xf32>
    %107 = arith.divf %105, %106 : vector<24x1xf32>
    %108 = vector.broadcast %107 : vector<24x1xf32> to vector<24x128xf32>
    %109 = arith.subf %101, %108 : vector<24x128xf32>
    %110 = arith.mulf %109, %109 : vector<24x128xf32>
    %cst_61 = arith.constant dense<0.000000e+00> : vector<24xf32>
    %111 = vector.multi_reduction <add>, %110, %cst_61 [1] : vector<24x128xf32> to vector<24xf32>
    %112 = vector.shape_cast %111 : vector<24xf32> to vector<24x1xf32>
    %cst_62 = arith.constant 1.280000e+02 : f32
    %113 = vector.broadcast %cst_62 : f32 to vector<24x1xf32>
    %114 = arith.divf %112, %113 : vector<24x1xf32>
    %115 = vector.broadcast %107 : vector<24x1xf32> to vector<24x128xf32>
    %116 = arith.subf %101, %115 : vector<24x128xf32>
    %cst_63 = arith.constant 9.99999996E-13 : f32
    %117 = vector.broadcast %cst_63 : f32 to vector<24x1xf32>
    %118 = arith.addf %114, %117 : vector<24x1xf32>
    %119 = math.rsqrt %118 : vector<24x1xf32>
    %120 = vector.broadcast %119 : vector<24x1xf32> to vector<24x128xf32>
    %121 = arith.mulf %116, %120 : vector<24x128xf32>
    %122 = vector.broadcast %102 : vector<1x128xf32> to vector<24x128xf32>
    %123 = arith.mulf %121, %122 : vector<24x128xf32>
    %124 = vector.broadcast %103 : vector<1x128xf32> to vector<24x128xf32>
    %125 = arith.addf %123, %124 : vector<24x128xf32>
    %c0_64 = arith.constant 0 : index
    %c0_65 = arith.constant 0 : index
    %c0_66 = arith.constant 0 : index
    %126 = vector.load %arg19[%c0_64, %c0_65, %c0_66] : memref<1x24x128xf32, #tpu.memory_space<vmem>>, vector<1x24x128xf32>
    %127 = vector.shape_cast %126 : vector<1x24x128xf32> to vector<24x128xf32>
    %128 = vector.shape_cast %125 : vector<24x128xf32> to vector<1x24x128xf32>
    tpu.vector_store %arg19[%c0_64, %c0_65, %c0_66], %128 {strides = array<i32>} : memref<1x24x128xf32, #tpu.memory_space<vmem>>, vector<1x24x128xf32>,
    return
  }
  func.func @transform_0(%arg0: i32) -> (i32, i32, i32) {
    %c0_i32 = arith.constant 0 : i32
    %c0_i32_0 = arith.constant 0 : i32
    %c0_i32_1 = arith.constant 0 : i32
    return %arg0, %c0_i32, %c0_i32_0 : i32, i32, i32
  }
  func.func @transform_1(%arg0: i32) -> (i32, i32, i32) {
    %c0_i32 = arith.constant 0 : i32
    %c0_i32_0 = arith.constant 0 : i32
    %c0_i32_1 = arith.constant 0 : i32
    return %arg0, %c0_i32, %c0_i32_0 : i32, i32, i32
  }
  func.func @transform_2(%arg0: i32) -> (i32, i32) {
    %c0_i32 = arith.constant 0 : i32
    %c0_i32_0 = arith.constant 0 : i32
    %c0_i32_1 = arith.constant 0 : i32
    return %c0_i32, %c0_i32_0 : i32, i32
  }
  func.func @transform_3(%arg0: i32) -> (i32, i32) {
    %c0_i32 = arith.constant 0 : i32
    %c0_i32_0 = arith.constant 0 : i32
    %c0_i32_1 = arith.constant 0 : i32
    return %c0_i32, %c0_i32_0 : i32, i32
  }
  func.func @transform_4(%arg0: i32) -> (i32, i32) {
    %c0_i32 = arith.constant 0 : i32
    %c0_i32_0 = arith.constant 0 : i32
    %c0_i32_1 = arith.constant 0 : i32
    return %c0_i32, %c0_i32_0 : i32, i32
  }
  func.func @transform_5(%arg0: i32) -> (i32, i32) {
    %c0_i32 = arith.constant 0 : i32
    %c0_i32_0 = arith.constant 0 : i32
    %c0_i32_1 = arith.constant 0 : i32
    return %c0_i32, %c0_i32_0 : i32, i32
  }
  func.func @transform_6(%arg0: i32) -> (i32, i32) {
    %c0_i32 = arith.constant 0 : i32
    %c0_i32_0 = arith.constant 0 : i32
    %c0_i32_1 = arith.constant 0 : i32
    return %c0_i32, %c0_i32_0 : i32, i32
  }
  func.func @transform_7(%arg0: i32) -> (i32, i32) {
    %c0_i32 = arith.constant 0 : i32
    %c0_i32_0 = arith.constant 0 : i32
    %c0_i32_1 = arith.constant 0 : i32
    return %c0_i32, %c0_i32_0 : i32, i32
  }
  func.func @transform_8(%arg0: i32) -> (i32, i32) {
    %c0_i32 = arith.constant 0 : i32
    %c0_i32_0 = arith.constant 0 : i32
    %c0_i32_1 = arith.constant 0 : i32
    return %c0_i32, %c0_i32_0 : i32, i32
  }
  func.func @transform_9(%arg0: i32) -> (i32, i32) {
    %c0_i32 = arith.constant 0 : i32
    %c0_i32_0 = arith.constant 0 : i32
    %c0_i32_1 = arith.constant 0 : i32
    return %c0_i32, %c0_i32_0 : i32, i32
  }
  func.func @transform_10(%arg0: i32) -> (i32, i32) {
    %c0_i32 = arith.constant 0 : i32
    %c0_i32_0 = arith.constant 0 : i32
    %c0_i32_1 = arith.constant 0 : i32
    return %c0_i32, %c0_i32_0 : i32, i32
  }
  func.func @transform_11(%arg0: i32) -> (i32, i32) {
    %c0_i32 = arith.constant 0 : i32
    %c0_i32_0 = arith.constant 0 : i32
    %c0_i32_1 = arith.constant 0 : i32
    return %c0_i32, %c0_i32_0 : i32, i32
  }
  func.func @transform_12(%arg0: i32) -> (i32, i32) {
    %c0_i32 = arith.constant 0 : i32
    %c0_i32_0 = arith.constant 0 : i32
    %c0_i32_1 = arith.constant 0 : i32
    return %c0_i32, %c0_i32_0 : i32, i32
  }
  func.func @transform_13(%arg0: i32) -> (i32, i32) {
    %c0_i32 = arith.constant 0 : i32
    %c0_i32_0 = arith.constant 0 : i32
    %c0_i32_1 = arith.constant 0 : i32
    return %c0_i32, %c0_i32_0 : i32, i32
  }
  func.func @transform_14(%arg0: i32) -> (i32, i32) {
    %c0_i32 = arith.constant 0 : i32
    %c0_i32_0 = arith.constant 0 : i32
    %c0_i32_1 = arith.constant 0 : i32
    return %c0_i32, %c0_i32_0 : i32, i32
  }
  func.func @transform_15(%arg0: i32) -> (i32, i32) {
    %c0_i32 = arith.constant 0 : i32
    %c0_i32_0 = arith.constant 0 : i32
    %c0_i32_1 = arith.constant 0 : i32
    return %c0_i32, %c0_i32_0 : i32, i32
  }
  func.func @transform_16(%arg0: i32) -> (i32, i32) {
    %c0_i32 = arith.constant 0 : i32
    %c0_i32_0 = arith.constant 0 : i32
    %c0_i32_1 = arith.constant 0 : i32
    return %c0_i32, %c0_i32_0 : i32, i32
  }
  func.func @transform_17(%arg0: i32) -> (i32, i32) {
    %c0_i32 = arith.constant 0 : i32
    %c0_i32_0 = arith.constant 0 : i32
    %c0_i32_1 = arith.constant 0 : i32
    return %c0_i32, %c0_i32_0 : i32, i32
  }
  func.func @transform_18(%arg0: i32) -> (i32, i32, i32) {
    %c0_i32 = arith.constant 0 : i32
    %c0_i32_0 = arith.constant 0 : i32
    %c0_i32_1 = arith.constant 0 : i32
    return %arg0, %c0_i32, %c0_i32_0 : i32, i32, i32
  }
}

</mosaic_0001>

<bundles_post_ra>
// kernel: tpu_custom_call.1
= control target key start
LH: loop header
LB: loop body
LE: loop exit
PB: predicated region body
PF: predicated region fallthrough
CT: control target
= control target key end

     0   :  { %s3322_s0 = inlined_call_operand.hbm [shape: f32[2,24,128], index: 0, kind: input, shape index: {}]   ;;  %s3323_s1 = inlined_call_operand.vmem [shape: f32[2,1,24], index: 1, kind: input, shape index: {}]   ;;  %s3324_s2 = inlined_call_operand.hbm [shape: bf16[128,128], index: 2, kind: input, shape index: {}]   ;;  %s3325_s3 = inlined_call_operand.hbm [shape: bf16[128,128], index: 3, kind: input, shape index: {}]   ;;  %s3326_s4 = inlined_call_operand.hbm [shape: bf16[128,128], index: 4, kind: input, shape index: {}]   ;;  %s3327_s5 = inlined_call_operand.vmem [shape: f32[1,128], index: 5, kind: input, shape index: {}]   ;;  %s3328_s6 = inlined_call_operand.vmem [shape: f32[1,128], index: 6, kind: input, shape index: {}]   ;;  %s3329_s7 = inlined_call_operand.vmem [shape: f32[1,128], index: 7, kind: input, shape index: {}]   ;;  %s3330_s8 = inlined_call_operand.hbm [shape: bf16[128,128], index: 8, kind: input, shape index: {}]   ;;  %s3331_s9 = inlined_call_operand.vmem [shape: f32[1,128], index: 9, kind: input, shape index: {}]   ;;  %s3332_s10 = inlined_call_operand.vmem [shape: f32[1,128], index: 10, kind: input, shape index: {}]   ;;  %s3333_s11 = inlined_call_operand.vmem [shape: f32[1,128], index: 11, kind: input, shape index: {}]   ;;  %s3334_s12 = inlined_call_operand.hbm [shape: bf16[128,256], index: 12, kind: input, shape index: {}]   ;;  %s3335_s13 = inlined_call_operand.vmem [shape: f32[1,256], index: 13, kind: input, shape index: {}]   ;;  %s3336_s14 = inlined_call_operand.hbm [shape: bf16[256,128], index: 14, kind: input, shape index: {}]   ;;  %s3337_s15 = inlined_call_operand.vmem [shape: f32[1,128], index: 15, kind: input, shape index: {}]   ;;  %s3338_s16 = inlined_call_operand.vmem [shape: f32[1,128], index: 16, kind: input, shape index: {}]   ;;  %s3339_s17 = inlined_call_operand.vmem [shape: f32[1,128], index: 17, kind: input, shape index: {}]   ;;  %s3340_s18 = inlined_call_operand.hbm [shape: f32[2,24,128], index: 18, kind: output, shape index: {}]  }
   0x1   :  { %3354 = sst [smem:[#allocation20_spill]] %s3322_s0 }
   0x2   :  { %3355 = sst [smem:[#allocation21_spill]] %s3323_s1 }
   0x3   :  { %3356 = sst [smem:[#allocation22_spill]] %s3324_s2 }
   0x4   :  { %3357 = sst [smem:[#allocation23_spill]] %s3325_s3 }
   0x5   :  { %3358 = sst [smem:[#allocation24_spill]] %s3326_s4 }
   0x6   :  { %3359 = sst [smem:[#allocation25_spill]] %s3331_s9 }
   0x7   :  { %3360 = sst [smem:[#allocation26_spill]] %s3332_s10 }
   0x8   :  { %3361 = sst [smem:[#allocation27_spill]] %s3333_s11 }
   0x9   :  { %3362 = sst [smem:[#allocation28_spill]] %s3335_s13 }
   0xa   :  { %3363 = sst [smem:[#allocation29_spill]] %s3337_s15 }
   0xb   :  { %3364 = sst [smem:[#allocation30_spill]] %s3338_s16 }
   0xc   :  { %3365 = sst [smem:[#allocation31_spill]] %s3339_s17 }
   0xd   :  { %3366 = sst [smem:[#allocation32_spill]] %s3340_s18 }
   0xe   :  { %23 = vsyncpa [#allocation3], 0 }
   0xf   :  { %25 = vsyncpa [#allocation3 + $0x1], 0 }
  0x10   :  { %26 = vsyncpa [#allocation6], 0 }
  0x11   :  { %27 = vsyncpa [#allocation9], 0 }
  0x12   :  { %28 = vsyncpa [#allocation12], 0 }
  0x13   :  { %29 = vsyncpa [#allocation4], 0 }
  0x14   :  { %31 = vsyncpa [#allocation4 + $0x1], 0  ;;  %s2896_s27 = smov 0   ;;  %s2898_s28 = smov 0  }
  0x15   :  { %s2900_s29 = smov 0   ;;  %s2902_s30 = smov 0  }
  0x16 LB: > { %s2786_s0 = smov [#allocation5]   ;;  %s2917_s1 = sadd.s32 4294967295, %s2784_s30   ;;  %s2784_s30 = sphi %s2902_s30, %s3405_s30   ;;  %s2780_s29 = sphi %s2900_s29, %s3404_s29   ;;  %s2776_s28 = sphi %s2898_s28, %s3403_s28   ;;  %s2772_s27 = sphi %s2896_s27, %s3402_s27  }
  0x17   : > { %s468_s19 = sshll.u32 %s2786_s0, 4  ;;  %p2014_p0 = scmp.ge.s32.totalorder %s2784_s30, 1  ;;  %s2922_s19 = int_to_ptr.vmem [resolvable:$true] %s468_s19 }
  0x18   : > { %p3349_p1 = scmp.eq.s32.totalorder %s2917_s1, 0  ;;  %p456_p2 = scmp.lt.s32.totalorder %s2784_s30, 3 }
  0x19   : > { %s2787_s21 = smov [#allocation8]   ;;  %s2788_s23 = smov [#allocation11]  }
  0x1a   : > { %p2924_p3 = pnand %p2014_p0, %p456_p2  ;;  %s494_s22 = sshll.u32 %s2787_s21, 4  ;;  %s2937_s22 = int_to_ptr.vmem [resolvable:$true] %s494_s22 }
  0x1b   : > { %s538_s24 = sshll.u32 %s2788_s23, 4  ;;  %s3369_s0 = sld [smem:[#allocation22_spill]]  ;;  %s2939_s24 = int_to_ptr.vmem [resolvable:$true] %s538_s24 }
  0x1c   : > { %s3367_s20 = scalar_select %p2924_p3, 1, 0 }
  0x1d   : > { %p2314_p5 = pneg %p2924_p3 }
  0x1f   : > { %p2933_p6 = pnand %p2314_p5, %p3349_p1 }
  0x21   : > { %s2508_s18 = scalar_lea.hbm %s3369_s0, 1024  ;;  %p2949_p8 = pneg %p2933_p6 }
  0x22   : > { %p2509_p7 = scmp.ne.s32.totalorder %s3369_s0, %s2508_s18  ;;  %p2515_p11 = scmp.lt.u32.totalorder %s2508_s18, %s3369_s0 }
  0x24   : > { %p2511_p9 = pnand %p2949_p8, %p2509_p7 }
  0x26   : > { %p2512_p10 = pneg %p2511_p9 }
  0x28   : > { %p2517_p12 = pnand %p2515_p11, %p2512_p10 }
  0x2a   : > { %2520 = shalt.err (!%p2517_p12)
}
  0x2b   : > { %s2521_s16 = scalar_lea.vmem %s2922_s19, 1024  ;;  %p2529_p5 = scmp.lt.s32.totalorder %s2922_s19, %s2922_s19 }
  0x2c   : > { %p2522_p13 = scmp.ne.s32.totalorder %s2922_s19, %s2521_s16  ;;  %p2530_p4 = scmp.lt.s32.totalorder %s2521_s16, %s2521_s16 }
  0x2e   : > { %p2524_p0 = pnand %p2522_p13, %p2949_p8  ;;  %p2531_p7 = por %p2530_p4, %p2529_p5 }
  0x30   : > { %p2525_p2 = pneg %p2524_p0 }
  0x32   : > { %p2532_p9 = pnand %p2531_p7, %p2525_p2 }
  0x34   : > { %2535 = shalt.err (!%p2532_p9)
}
  0x35   : > { %s3344_s17 = smov 64   ;;  %s3346_s15 = smov 4  }
  0x36   : > { %2317 = dma.hbm_to_vmem [thread:$0]  (!%p2933_p6), %s3369_s0, 1024, %s2922_s19, [#allocation6], %s3344_s17, %s3344_s17, %s3346_s15  }
  0x37   : > { %s3371_s4 = sld [smem:[#allocation24_spill]] }
  0x3d   : > { %s2536_s16 = scalar_lea.hbm %s3371_s4, 1024 }
  0x3e   : > { %p2537_p4 = scmp.ne.s32.totalorder %s3371_s4, %s2536_s16  ;;  %p2543_p12 = scmp.lt.u32.totalorder %s2536_s16, %s3371_s4 }
  0x40   : > { %p2539_p10 = pnand %p2537_p4, %p2949_p8 }
  0x42   : > { %p2540_p11 = pneg %p2539_p10 }
  0x44   : > { %p2545_p13 = pnand %p2543_p12, %p2540_p11 }
  0x46   : > { %2548 = shalt.err (!%p2545_p13)
}
  0x47   : > { %s2549_s19 = scalar_lea.vmem %s2937_s22, 1024  ;;  %p2557_p7 = scmp.lt.s32.totalorder %s2937_s22, %s2937_s22 }
  0x48   : > { %p2550_p0 = scmp.ne.s32.totalorder %s2937_s22, %s2549_s19  ;;  %p2558_p9 = scmp.lt.s32.totalorder %s2549_s19, %s2549_s19 }
  0x4a   : > { %p2552_p2 = pnand %p2550_p0, %p2949_p8  ;;  %p2559_p4 = por %p2558_p9, %p2557_p7 }
  0x4c   : > { %p2553_p5 = pneg %p2552_p2 }
  0x4e   : > { %p2560_p10 = pnand %p2559_p4, %p2553_p5 }
  0x50   : > { %2563 = shalt.err (!%p2560_p10)
}
  0x51   : > { %2323 = dma.hbm_to_vmem [thread:$0]  (!%p2933_p6), %s3371_s4, 1024, %s2937_s22, [#allocation9], %s3344_s17, %s3344_s17, %s3346_s15  }
  0x52   : > { %s2564_s18 = scalar_lea.hbm %s3334_s12, 2048 }
  0x53   : > { %p2565_p11 = scmp.ne.s32.totalorder %s3334_s12, %s2564_s18  ;;  %p2571_p0 = scmp.lt.u32.totalorder %s2564_s18, %s3334_s12 }
  0x55   : > { %p2567_p12 = pnand %p2565_p11, %p2949_p8 }
  0x57   : > { %p2568_p13 = pneg %p2567_p12 }
  0x59   : > { %p2573_p2 = pnand %p2571_p0, %p2568_p13 }
  0x5b   : > { %2576 = shalt.err (!%p2573_p2)
}
  0x5c   : > { %s2577_s22 = scalar_lea.vmem %s2939_s24, 2048  ;;  %p2585_p4 = scmp.lt.s32.totalorder %s2939_s24, %s2939_s24 }
  0x5d   : > { %p2578_p5 = scmp.ne.s32.totalorder %s2939_s24, %s2577_s22  ;;  %p2586_p10 = scmp.lt.s32.totalorder %s2577_s22, %s2577_s22 }
  0x5f   : > { %p2580_p7 = pnand %p2578_p5, %p2949_p8  ;;  %p2587_p11 = por %p2586_p10, %p2585_p4 }
  0x61   : > { %p2581_p9 = pneg %p2580_p7 }
  0x63   : > { %p2588_p12 = pnand %p2587_p11, %p2581_p9 }
  0x65   : > { %2591 = shalt.err (!%p2588_p12)
}
  0x66   : > { %s3351_s19 = smov 128   ;;  %s3352_s9 = smov 8  }
  0x67   : > { %2329 = dma.hbm_to_vmem [thread:$0]  (!%p2933_p6), %s3334_s12, 2048, %s2939_s24, [#allocation12], %s3351_s19, %s3351_s19, %s3352_s9  }
  0x68   : > { %s2793_s13 = smov [#allocation7]   ;;  %s2794_s25 = smov [#allocation10]  }
  0x69   : > { %s481_s18 = sshll.u32 %s2793_s13, 4  ;;  %s516_s26 = sshll.u32 %s2794_s25, 4  ;;  %s482_s18 = int_to_ptr.vmem [resolvable:$true] %s481_s18  ;;  %s517_s26 = int_to_ptr.vmem [resolvable:$true] %s516_s26 }
  0x6a   : > { %s3372_s3 = sld [smem:[#allocation23_spill]] }
  0x70   : > { %s2592_s22 = scalar_lea.hbm %s3372_s3, 1024 }
  0x71   : > { %p2593_p13 = scmp.ne.s32.totalorder %s3372_s3, %s2592_s22  ;;  %p2599_p5 = scmp.lt.u32.totalorder %s2592_s22, %s3372_s3 }
  0x73   : > { %p2595_p0 = pnand %p2593_p13, %p2949_p8 }
  0x75   : > { %p2596_p2 = pneg %p2595_p0 }
  0x77   : > { %p2601_p7 = pnand %p2599_p5, %p2596_p2 }
  0x79   : > { %2604 = shalt.err (!%p2601_p7)
}
  0x7a   : > { %s2605_s24 = scalar_lea.vmem %s482_s18, 1024  ;;  %p2613_p11 = scmp.lt.s32.totalorder %s482_s18, %s482_s18 }
  0x7b   : > { %p2606_p9 = scmp.ne.s32.totalorder %s482_s18, %s2605_s24  ;;  %p2614_p12 = scmp.lt.s32.totalorder %s2605_s24, %s2605_s24 }
  0x7d   : > { %p2608_p4 = pnand %p2606_p9, %p2949_p8  ;;  %p2615_p1 = por %p2614_p12, %p2613_p11 }
  0x7f   : > { %p2609_p10 = pneg %p2608_p4 }
  0x81   : > { %p2616_p3 = pnand %p2615_p1, %p2609_p10 }
  0x83   : > { %2619 = shalt.err (!%p2616_p3)
}
  0x84   : > { %s3373_s17 = smov 4   ;;  %s3374_s15 = smov 64  }
  0x85   : > { %2320 = dma.hbm_to_vmem [thread:$0]  (!%p2933_p6), %s3372_s3, 1024, %s482_s18, [#allocation6], %s3374_s15, %s3374_s15, %s3373_s17  }
  0x86   : > { %s2620_s13 = scalar_lea.hbm %s3330_s8, 1024 }
  0x87   : > { %p2621_p1 = scmp.ne.s32.totalorder %s3330_s8, %s2620_s13  ;;  %p2627_p0 = scmp.lt.u32.totalorder %s2620_s13, %s3330_s8 }
  0x89   : > { %p2623_p3 = pnand %p2621_p1, %p2949_p8 }
  0x8b   : > { %p2624_p13 = pneg %p2623_p3 }
  0x8d   : > { %p2629_p2 = pnand %p2627_p0, %p2624_p13 }
  0x8f   : > { %2632 = shalt.err (!%p2629_p2)
}
  0x90   : > { %s2633_s24 = scalar_lea.vmem %s517_s26, 1024  ;;  %p2641_p4 = scmp.lt.s32.totalorder %s517_s26, %s517_s26 }
  0x91   : > { %p2634_p5 = scmp.ne.s32.totalorder %s517_s26, %s2633_s24  ;;  %p2642_p10 = scmp.lt.s32.totalorder %s2633_s24, %s2633_s24 }
  0x93   : > { %p2636_p7 = pnand %p2634_p5, %p2949_p8  ;;  %p2643_p11 = por %p2642_p10, %p2641_p4 }
  0x95   : > { %p2637_p9 = pneg %p2636_p7 }
  0x97   : > { %p2644_p12 = pnand %p2643_p11, %p2637_p9 }
  0x99   : > { %2647 = shalt.err (!%p2644_p12)
}
  0x9a   : > { %2326 = dma.hbm_to_vmem [thread:$0]  (!%p2933_p6), %s3330_s8, 1024, %s517_s26, [#allocation9], %s3374_s15, %s3374_s15, %s3373_s17  }
  0x9b   : > { %s2795_s0 = smov [#allocation13]   ;;  %s2648_s25 = scalar_lea.hbm %s3336_s14, 2048 }
  0x9c   : > { %s554_s10 = sshll.u32 %s2795_s0, 4  ;;  %p2649_p1 = scmp.ne.s32.totalorder %s3336_s14, %s2648_s25  ;;  %s555_s10 = int_to_ptr.vmem [resolvable:$true] %s554_s10 }
  0x9d   : > { %p2655_p0 = scmp.lt.u32.totalorder %s2648_s25, %s3336_s14 }
  0x9e   : > { %p2651_p3 = pnand %p2649_p1, %p2949_p8 }
  0xa0   : > { %p2652_p13 = pneg %p2651_p3 }
  0xa2   : > { %p2657_p2 = pnand %p2655_p0, %p2652_p13 }
  0xa4   : > { %2660 = shalt.err (!%p2657_p2)
}
  0xa5   : > { %s2661_s26 = scalar_lea.vmem %s555_s10, 2048  ;;  %p2669_p4 = scmp.lt.s32.totalorder %s555_s10, %s555_s10 }
  0xa6   : > { %p2662_p5 = scmp.ne.s32.totalorder %s555_s10, %s2661_s26  ;;  %p2670_p10 = scmp.lt.s32.totalorder %s2661_s26, %s2661_s26 }
  0xa8   : > { %p2664_p7 = pnand %p2662_p5, %p2949_p8  ;;  %p2671_p11 = por %p2670_p10, %p2669_p4 }
  0xaa   : > { %p2665_p9 = pneg %p2664_p7 }
  0xac   : > { %p2672_p12 = pnand %p2671_p11, %p2665_p9 }
  0xae   : > { %2675 = shalt.err (!%p2672_p12)
}
  0xaf   : > { %2332 = dma.hbm_to_vmem [thread:$0]  (!%p2933_p6), %s3336_s14, 2048, %s555_s10, [#allocation12], %s3374_s15, %s3374_s15, %s3373_s17  }
  0xb0   : > { %s2013_s2 = sadd.s32 4294967294, %s2784_s30   ;;  %s3090_s21 = sadd.s32 1, %s2784_s30  }
  0xb1   : > { %s41_s0 = ssub.s32 %s2784_s30, %s3090_s21  ;;  %s44_s11 = sadd.s32 1, %s2780_s29 }
  0xb2   : > { %p42_p8 = scmp.eq.s32.totalorder %s41_s0, 0  ;;  %p51_p1 = scmp.ne.s32.totalorder %s2780_s29, %s2776_s28 }
  0xb3   : > { %p52_p3 = scmp.eq.s32.totalorder %s2784_s30, 0  ;;  %p57_p13 = scmp.ne.s32.totalorder %s2776_s28, %s2772_s27 }
  0xb4   : > { %s3101_s13 = scalar_select %p42_p8, %s2780_s29, %s44_s11  }
  0xb5   : > { %p53_p0 = por %p52_p3, %p51_p1  ;;  %p3375_p2 = scmp.eq.s32.totalorder %s2917_s1, 0 }
  0xb6   : > { %p443_p6 = scmp.eq.s32.totalorder %s2917_s1, 1  ;;  %p449_p7 = scmp.eq.s32.totalorder %s2013_s2, 1 }
  0xb7   : > { %p3105_p5 = por %p3375_p2, %p57_p13  ;;  %p2347_p9 = scmp.lt.s32.totalorder %s2784_s30, 2 }
  0xb8   : > { %s577_s17 = sand.u32 1, %s2780_s29   ;;  %p3112_p4 = por %p443_p6, %p51_p1 }
  0xb9   : > { %p3116_p10 = por %p449_p7, %p57_p13  ;;  %s2282_s23 = smul.u32 24, %s577_s17 }
  0xba   : > { %s3377_s15 = scalar_select %p3112_p4, 1, 0 }
  0xbb   : > { %s3378_s10 = scalar_select %p3116_p10, 1, 0 }
  0xbc   : > { %s2283_s16 = smul.u32 384, %s2784_s30  ;;  %p3121_p11 = pnand %p2347_p9, %p53_p0 }
  0xbd   : > { %s3380_s18 = sld [smem:[#allocation20_spill]]  ;;  %s581_s2 = scalar_lea.vmem [#allocation2], %s2282_s23 }
  0xbe   : > { %s588_s0 = sshll.u32 %s581_s2, 4  ;;  %s3132_s11 = scalar_lea.sflag [#allocation3], %s577_s17  ;;  %s3130_s0 = int_to_ptr.vmem [resolvable:$true] %s588_s0 }
  0xbf   : > { %p2678_p8 = pneg %p3121_p11 }
  0xc3   : > { %s3128_s4 = scalar_lea.hbm %s3380_s18, %s2283_s16  ;;  %s2681_s26 = scalar_lea.hbm %s3380_s18, 768 }
  0xc4   : > { %s2676_s19 = scalar_lea.hbm %s3128_s4, 384  ;;  %p2682_p13 = scmp.lt.u32.totalorder %s3128_s4, %s3380_s18 }
  0xc5   : > { %p2677_p12 = scmp.ne.s32.totalorder %s3128_s4, %s2676_s19  ;;  %p2683_p0 = scmp.lt.u32.totalorder %s2681_s26, %s2676_s19 }
  0xc6   : > { %p2685_p6 = scmp.lt.u32.totalorder %s2676_s19, %s3128_s4 }
  0xc7   : > { %p2679_p1 = pnand %p2678_p8, %p2677_p12  ;;  %p2684_p2 = por %p2683_p0, %p2682_p13 }
  0xc9   : > { %p2680_p3 = pneg %p2679_p1  ;;  %p2686_p7 = por %p2685_p6, %p2684_p2 }
  0xcb   : > { %p2687_p9 = pnand %p2686_p7, %p2680_p3 }
  0xcd   : > { %2690 = shalt.err (!%p2687_p9)
}
  0xce   : > { %s2691_s17 = scalar_lea.vmem %s3130_s0, 384  ;;  %s2796_s23 = smov [#allocation2]  }
  0xcf   : > { %p2692_p12 = scmp.ne.s32.totalorder %s3130_s0, %s2691_s17  ;;  %s2696_s2 = sshll.u32 %s2796_s23, 4  ;;  %s2697_s2 = int_to_ptr.vmem [resolvable:$false] %s2696_s2 }
  0xd0   : > { %s2698_s3 = scalar_lea.vmem %s2697_s2, 768  ;;  %p2699_p4 = scmp.lt.s32.totalorder %s3130_s0, %s2697_s2 }
  0xd1   : > { %p2694_p1 = pnand %p2692_p12, %p2678_p8  ;;  %p2700_p13 = scmp.lt.s32.totalorder %s2698_s3, %s2691_s17 }
  0xd3   : > { %p2695_p10 = pneg %p2694_p1  ;;  %p2701_p0 = por %p2700_p13, %p2699_p4 }
  0xd5   : > { %p2702_p2 = pnand %p2701_p0, %p2695_p10 }
  0xd7   : > { %2705 = shalt.err (!%p2702_p2)
}
  0xd8   : > { %s3381_s19 = smov 8   ;;  %s3382_s9 = smov 128  }
  0xd9   : > { %2336 = dma.hbm_to_vmem [thread:$0]  (!%p3121_p11), %s3128_s4, 384, %s3130_s0, %s3132_s11, %s3382_s9, %s3382_s9, %s3381_s19  }
  0xda   : > { %p3383_p8 = scmp.ne.s32.totalorder %s3367_s20, 0 }
  0xdb   : > { %s3166_s16 = sand.u32 (!%p3383_p8), 1, %s2776_s28  }
  0xdc   : > { %606 = sbr.rel (%p3383_p8) target bundleno = 2595 (0xa23), region = 92  ;;  %s609_s26 = scalar_lea.sflag (!%p3383_p8), [#allocation3], %s3166_s16 }
  0xdd   : > { %s2284_s24 = smul.u32 (!%p3383_p8), 24, %s3166_s16 }
  0xdf   : > { %s3172_s22 = scalar_lea.vmem (!%p3383_p8), [#allocation2], %s2284_s24 }
  0xe3   : > { %2751 = dma.done.wait (%p3105_p5), %s609_s26, 384  }
  0xe4   : > { %2753 = vsyncadd (%p3105_p5), %s609_s26, 4294966912  ;;  %p3384_p4 = scmp.eq.s32.totalorder %s2917_s1, 0 }
  0xe6   : > { %2755 = dma.done.wait (%p3384_p4), [#allocation6], 2048   ;;  %p3385_p10 = pmov %p3384_p4 }
  0xe7   : > { %p3386_p11 = pmov %p3384_p4 }
  0xe8   : > { %2757 = vsyncadd (%p3385_p10), [#allocation6], 4294965248 }
  0xe9   : > { %2759 = dma.done.wait (%p3386_p11), [#allocation9], 2048   ;;  %p3387_p3 = pmov %p3384_p4 }
  0xeb   : > { %2761 = vsyncadd (%p3387_p3), [#allocation9], 4294965248  ;;  %p3388_p6 = pmov %p3387_p3 }
  0xec   : > { %p3389_p7 = pmov %p3387_p3 }
  0xed   : > { %2763 = dma.done.wait (%p3388_p6), [#allocation12], 4096  }
  0xee   : > { %2765 = vsyncadd (%p3389_p7), [#allocation12], 4294963200  ;;  %v2400_v0 = vld [vmem:[#allocation7] sm:$0xff]   ;;  %v2401_v1 = vld [vmem:[#allocation7 + $0x8] sm:$0xff]   ;;  %vm1169_vm0 = vcmask 1043456   ;;  %p692_p5 = scmp.lt.s32.totalorder %s2917_s1, 1  ;;  %v1119_v60 = vlaneseq }
  0xef   : > { %2205 = vmatprep.subr.bf16.mxu1 %v2400_v0  ;;  %v2403_v2 = vld [vmem:[#allocation5] sm:$0xff]   ;;  %v2402_v3 = vld [vmem:[#allocation7 + $0x10] sm:$0xff]   ;;  %v2405_v4 = vld [vmem:[#allocation5 + $0x8] sm:$0xff]   ;;  %s3390_s19 = sld [smem:[#allocation21_spill]]  ;;  %vm1127_vm1 = vcmask 195584   ;;  %s3391_s20 = sld [smem:[#allocation25_spill]] }
  0xf0   : > { %2206 = vmatpush3.bf16.msra.mxu1 %v2400_v0  ;;  %2185 = vmatprep.subr.bf16.mxu0 %v2403_v2  ;;  %v2407_v5 = vld [vmem:[#allocation5 + $0x10] sm:$0xff]   ;;  %v2404_v6 = vld [vmem:[#allocation7 + $0x18] sm:$0xff]   ;;  %v2406_v8 = vld [vmem:[#allocation7 + $0x20] sm:$0xff]   ;;  %s693_s23 = scalar_select %p692_p5, %s2917_s1, 1  ;;  %v3217_v63 = vshrl.u32 %v1119_v60, 7 }
  0xf1   : > { %2207 = vmatprep.subr.bf16.mxu1 %v2401_v1  ;;  %2186 = vmatpush3.bf16.msra.mxu0 %v2403_v2  ;;  %v2409_v7 = vld [vmem:[#allocation5 + $0x18] sm:$0xff]   ;;  %v3191_v9 = vld [vmem:[%s3172_s22] sm:$0xff]  ;;  %v2411_v12 = vld [vmem:[#allocation5 + $0x20] sm:$0xff]   ;;  %s3392_s0 = sld [smem:[#allocation26_spill]]  ;;  %s3396_s4 = sld [smem:[#allocation30_spill]] }
  0xf2   : > { %2187 = vmatprep.subr.bf16.mxu0 %v2405_v4  ;;  %v3194_v10 = vld [vmem:[%s3172_s22 + $0x8] sm:$0xff]  ;;  %v2408_v13 = vld [vmem:[#allocation7 + $0x28] sm:$0xff]   ;;  %v3199_v18 = vld [vmem:[%s3172_s22 + $0x10] sm:$0xff]  ;;  %s3395_s22 = sld [smem:[#allocation29_spill]]  ;;  %s3397_s17 = sld [smem:[#allocation31_spill]] }
  0xf3   : > { %v699_v11 = vpack.c.bf16 %v3194_v10, %v3191_v9  ;;  %v2413_v14 = vld [vmem:[#allocation5 + $0x28] sm:$0xff]   ;;  %v2410_v15 = vld [vmem:[#allocation7 + $0x30] sm:$0xff]   ;;  %v2412_v17 = vld [vmem:[#allocation7 + $0x38] sm:$0xff]   ;;  %v700_v21 = vpack.c.bf16 %v3199_v18, %v3199_v18  ;;  %s2285_s2 = smul.u32 384, %s2917_s1  ;;  %s3398_s26 = sld [smem:[#allocation32_spill]] }
  0xf4   : > { %2208 = vmatpush3.bf16.msra.mxu1 %v2401_v1  ;;  %v2414_v16 = vld [vmem:[#allocation5 + $0x30] sm:$0xff]   ;;  %v2415_v19 = vld [vmem:[#allocation5 + $0x38] sm:$0xff]   ;;  %v2416_v20 = vld [vmem:[#allocation8] sm:$0xff]   ;;  %v1121_v1 = vsub.s32 0, %v3217_v63  ;;  %p3399_p12 = scmp.ne.s32.totalorder %s3377_s15, 0  ;;  %s2798_s1 = smov [#allocation14]  }
  0xf5   : > { %2209 = vmatprep.subr.bf16.mxu1 %v2402_v3  ;;  %2188 = vmatpush3.bf16.msra.mxu0 %v2405_v4  ;;  %v2417_v22 = vld [vmem:[#allocation8 + $0x8] sm:$0xff]   ;;  %v2418_v23 = vld [vmem:[#allocation8 + $0x10] sm:$0xff]   ;;  %v2419_v24 = vld [vmem:[#allocation8 + $0x18] sm:$0xff]   ;;  %s694_s9 = scalar_lea.vmem %s3390_s19, %s693_s23  ;;  %s3393_s23 = sld [smem:[#allocation27_spill]] }
  0xf6   : > { %2189 = vmatprep.subr.bf16.mxu0 %v2407_v5  ;;  %2221 = vmatprep.mubr.bf16.mxu1 %v699_v11  ;;  %v2420_v25 = vld [vmem:[#allocation8 + $0x20] sm:$0xff]   ;;  %v2421_v26 = vld [vmem:[#allocation8 + $0x28] sm:$0xff]   ;;  %v2422_v27 = vld [vmem:[#allocation8 + $0x30] sm:$0xff]   ;;  %s3394_s19 = sld [smem:[#allocation28_spill]]  ;;  %s2710_s25 = sshll.u32 %s2798_s1, 4  ;;  %s2711_s25 = int_to_ptr.vmem [resolvable:$false] %s2710_s25 }
  0xf7   : > { %2201 = vmatprep.mubr.bf16.mxu0 %v699_v11  ;;  %v2423_v28 = vld [vmem:[#allocation8 + $0x38] sm:$0xff]   ;;  %v2039_v30 = vld [vmem:[%s3328_s6] ss:$0 sm:$0xff] }
  0xf8   : > { %2210 = vmatpush3.bf16.msra.mxu1 %v2402_v3  ;;  %v2030_v33 = vld [vmem:[%s3327_s5] ss:$0 sm:$0xff] }
  0xf9   : > { %2211 = vmatprep.subr.bf16.mxu1 %v2404_v6  ;;  %2190 = vmatpush3.bf16.msra.mxu0 %v2407_v5  ;;  %v2048_v49 = vld [vmem:[%s3329_s7] ss:$0 sm:$0xff] }
  0xfa   : > { %2191 = vmatprep.subr.bf16.mxu0 %v2409_v7  ;;  %v1115_v61 = vld [vmem:[%s694_s9] sm:$0x1] }
  0xfb   : > { %v2057_v62 = vadd.f32 -1.0, %v1115_v61 }
  0xfc   : > { %2212 = vmatpush3.bf16.msra.mxu1 %v2404_v6 }
  0xfd   : > { %2213 = vmatprep.subr.bf16.mxu1 %v2406_v8  ;;  %2192 = vmatpush3.bf16.msra.mxu0 %v2409_v7  ;;  %v1117_v0 = vmul.f32 1e+09, %v2057_v62 }
  0xfe   : > { %2193 = vmatprep.subr.bf16.mxu0 %v2411_v12 }
  0xff   : > { %v1122_v2 = vrot.slane %v1117_v0, %v1121_v1 }
 0x100   : > { %2214 = vmatpush3.bf16.msra.mxu1 %v2406_v8 }
 0x101   : > { %2215 = vmatprep.subr.bf16.mxu1 %v2408_v13  ;;  %2194 = vmatpush3.bf16.msra.mxu0 %v2411_v12 }
 0x102   : > { %2195 = vmatprep.subr.bf16.mxu0 %v2413_v14 }
 0x104   : > { %2216 = vmatpush3.bf16.msra.mxu1 %v2408_v13 }
 0x105   : > { %2217 = vmatprep.subr.bf16.mxu1 %v2410_v15  ;;  %2196 = vmatpush3.bf16.msra.mxu0 %v2413_v14 }
 0x106   : > { %2197 = vmatprep.subr.bf16.mxu0 %v2414_v16 }
 0x108   : > { %2218 = vmatpush3.bf16.msra.mxu1 %v2410_v15 }
 0x109   : > { %2219 = vmatprep.subr.bf16.mxu1 %v2412_v17  ;;  %2198 = vmatpush3.bf16.msra.mxu0 %v2414_v16 }
 0x10a   : > { %2199 = vmatprep.subr.bf16.mxu0 %v2415_v19 }
 0x10c   : > { %2220 = vmatpush3.bf16.msra.mxu1 %v2412_v17 }
 0x10d   : > { %2200 = vmatpush3.bf16.msra.mxu0 %v2415_v19 }
 0x10e   : > { %2225 = vmatprep.subr.bf16.mxu0 %v2416_v20 }
 0x10f   : > { %2222 = vmatmul.mubr.bf16.vlgmr.msra.gmra.mrb[0].mxu1 %v700_v21 }
 0x110   : > { %2202 = vmatmul.mubr.bf16.vlgmr.msra.gmra.mrb[0].mxu0 %v700_v21 }
 0x111   : > { %2226 = vmatpush3.bf16.msra.mxu0 %v2416_v20  ;;  %2241 = vmatprep.mubr.bf16.mxu0 %v699_v11 }
 0x112   : > { %2227 = vmatprep.subr.bf16.mxu0 %v2417_v22 }
 0x115   : > { %2228 = vmatpush3.bf16.msra.mxu0 %v2417_v22 }
 0x116   : > { %2229 = vmatprep.subr.bf16.mxu0 %v2418_v23 }
 0x119   : > { %2230 = vmatpush3.bf16.msra.mxu0 %v2418_v23 }
 0x11a   : > { %2231 = vmatprep.subr.bf16.mxu0 %v2419_v24 }
 0x11d   : > { %2232 = vmatpush3.bf16.msra.mxu0 %v2419_v24 }
 0x11e   : > { %2233 = vmatprep.subr.bf16.mxu0 %v2420_v25 }
 0x121   : > { %2234 = vmatpush3.bf16.msra.mxu0 %v2420_v25 }
 0x122   : > { %2235 = vmatprep.subr.bf16.mxu0 %v2421_v26 }
 0x125   : > { %2236 = vmatpush3.bf16.msra.mxu0 %v2421_v26 }
 0x126   : > { %2237 = vmatprep.subr.bf16.mxu0 %v2422_v27 }
 0x129   : > { %2238 = vmatpush3.bf16.msra.mxu0 %v2422_v27 }
 0x12a   : > { %2239 = vmatprep.subr.bf16.mxu0 %v2423_v28 }
 0x12d   : > { %2240 = vmatpush3.bf16.msra.mxu0 %v2423_v28 }
 0x130   : > { %2242 = vmatmul.mubr.bf16.vlgmr.msra.gmra.mrb[4].mxu0 %v700_v21 }
 0x1e2   : > { %v2223_v29 = vpop.f32.mrb[0].mxu1 }
 0x1e3   : > { %v925_v31 = vpop.f32.mrb[1].mxu1  ;;  %v2203_v35 = vpop.f32.mrb[0].mxu0  ;;  %v934_v36 = vadd.f32 %v2223_v29, %v2039_v30 }
 0x1e4   : > { %v2224_v32 = vpop.f32.mrb[2].mxu1  ;;  %v926_v37 = vadd.f32 %v2039_v30, %v925_v31  ;;  %v806_v39 = vpop.f32.mrb[1].mxu0  ;;  %v815_v47 = vadd.f32 %v2203_v35, %v2030_v33 }
 0x1e5   : > { %v928_v34 = vpop.f32.mrb[3].mxu1  ;;  %v807_v40 = vadd.f32 %v2030_v33, %v806_v39  ;;  %v2204_v41 = vpop.f32.mrb[2].mxu0  ;;  %v1061_v45 = vpack.c.bf16 %v934_v36, %v934_v36 }
 0x1e6   : > { %v929_v38 = vadd.f32 %v2039_v30, %v928_v34  ;;  %v809_v43 = vpop.f32.mrb[3].mxu0  ;;  %v1059_v48 = vpack.c.bf16 %v815_v47, %v815_v47  ;;  %v2424_v34 = vld [vmem:[#allocation10] sm:$0xff]   ;;  %v2426_v47 = vld [vmem:[#allocation10 + $0x10] sm:$0xff]  }
 0x1e7   : > { %v810_v44 = vadd.f32 %v2030_v33, %v809_v43 }
 0x1e8   : > { %v1060_v42 = vpack.c.bf16 %v929_v38, %v926_v37 }
 0x1e9   : > { %v1058_v46 = vpack.c.bf16 %v810_v44, %v807_v40 }
 0x1ea   : > { %2245 = vmatprep.subr.bf16.mxu0 %v1060_v42 }
 0x1eb   : > { %2246 = vmatpush3.bf16.xpose.msra.mxu0 %v1060_v42  ;;  %2249 = vmatprep.mubr.bf16.mxu0 %v1058_v46  ;;  %v2425_v46 = vld [vmem:[#allocation10 + $0x8] sm:$0xff]  }
 0x1ec   : > { %2247 = vmatprep.subr.bf16.mxu0 %v1061_v45 }
 0x1f3   : > { %2248 = vmatpush3.bf16.xpose.msra.mxu0 %v1061_v45 }
 0x1fa   : > { %2250 = vmatmul.mubr.bf16.vlgmr.msra.gmra.mrb[8].mxu0 %v1059_v48  ;;  %v2427_v48 = vld [vmem:[#allocation10 + $0x18] sm:$0xff]  }
 0x203   : > { %v2243_v50 = vpop.f32.mrb[4].mxu0 }
 0x204   : > { %v1044_v51 = vpop.f32.mrb[5].mxu0  ;;  %v1053_v52 = vadd.f32 %v2243_v50, %v2048_v49  ;;  %v2429_v50 = vld [vmem:[#allocation10 + $0x28] sm:$0xff]  }
 0x205   : > { %v1045_v53 = vadd.f32 %v2048_v49, %v1044_v51  ;;  %v2244_v54 = vpop.f32.mrb[6].mxu0  ;;  %v2430_v51 = vld [vmem:[#allocation10 + $0x30] sm:$0xff]  }
 0x206   : > { %v1047_v55 = vpop.f32.mrb[7].mxu0  ;;  %v1063_v57 = vpack.c.bf16 %v1053_v52, %v1053_v52  ;;  %v2431_v52 = vld [vmem:[#allocation10 + $0x38] sm:$0xff]  }
 0x207   : > { %v1048_v56 = vadd.f32 %v2048_v49, %v1047_v55  ;;  %v2428_v49 = vld [vmem:[#allocation10 + $0x20] sm:$0xff]  }
 0x208   : > { %v1171_v59 = vsel %vm1169_vm0, %v1063_v57, 0 }
 0x209   : > { %v1062_v58 = vpack.c.bf16 %v1048_v56, %v1045_v53 }
 0x20b   : > { %2253 = vmatprep.subr.bf16.mxu1 %v1062_v58 }
 0x20c   : > { %2254 = vmatpush3.bf16.msra.mxu1 %v1062_v58 }
 0x20d   : > { %2281 = vmatprep.subr.msk.bf16.mxu1 %vm1169_vm0, %v1063_v57 }
 0x210   : > { %2256 = vmatpush3.bf16.msra.mxu1 %v1171_v59  ;;  %v2060_v59 = vld [vmem:[%s3391_s20] ss:$0 sm:$0xff] }
 0x211   : > { %2261 = vmatprep.subr.bf16.mxu1 %v2424_v34 }
 0x2cd   : > { %v2251_v3 = vpop.f32.mrb[8].mxu0 }
 0x2ce   : > { %v1114_v4 = vmul.f32 0.088388346, %v2251_v3  ;;  %v1098_v5 = vpop.f32.mrb[9].mxu0 }
 0x2cf   : > { %v1112_v6 = vmul.f32 0.088388346, %v1098_v5  ;;  %v2252_v7 = vpop.f32.mrb[10].mxu0 }
 0x2d0   : > { %v1101_v8 = vpop.f32.mrb[11].mxu0  ;;  %v1126_v11 = vadd.f32 %v1122_v2, %v1114_v4 }
 0x2d1   : > { %v1113_v12 = vmul.f32 0.088388346, %v1101_v8  ;;  %v1124_v13 = vadd.f32 %v1122_v2, %v1112_v6  ;;  %v2432_v8 = vld [vmem:[#allocation11] ss:$8 sps:$4 sm:$0xff]  }
 0x2d2   : > { %v1134_v14 = vsel %vm1127_vm1, %v1126_v11, -inf }
 0x2d3   : > { %1135 = vmax.xlane.f32.xlu1 %v1134_v14  ;;  %v1128_v15 = vsel %vm1127_vm1, %v1124_v13, -inf  ;;  %v1125_v16 = vadd.f32 %v1122_v2, %v1113_v12  ;;  %v2437_v12 = vld [vmem:[#allocation11 + $0x14] ss:$8 sps:$4 sm:$0xff]  }
 0x2d4   : > { %1129 = vmax.xlane.f32.xlu0 %v1128_v15 }
 0x2d5   : > { %v1131_v17 = vsel %vm1127_vm1, %v1125_v16, -inf }
 0x2d8   : > { %1132 = vmax.xlane.f32.xlu0 %v1131_v17 }
 0x360   : > { %v1136_v19 = vpop.xlane.xlu1 %1135 }
 0x361   : > { %v1139_v20 = vsub.f32 %v1126_v11, %v1136_v19  ;;  %v1130_v21 = vpop.xlane.xlu0 %1129  ;;  %v2434_v11 = vld [vmem:[#allocation11 + $0x4] ss:$8 sps:$4 sm:$0xff]  }
 0x362   : > { %v1137_v22 = vsub.f32 %v1124_v13, %v1130_v21  ;;  %1509 = vmatprep.subr.bf16.mxu0 %v2434_v11  ;;  %v2435_v13 = vld [vmem:[#allocation11 + $0x10] ss:$8 sps:$4 sm:$0xff]   ;;  %v2465_v11 = vld [vmem:[#allocation13 + $0x20] sm:$0xff]  }
 0x363   : > { %v1144_v23 = vmul.f32 1.442695, %v1139_v20  ;;  %1510 = vmatpush1.bf16.msra.mxu0 %v2432_v8  ;;  %v2464_v8 = vld [vmem:[#allocation13 + $0x60] sm:$0xff]  }
 0x364   : > { %v1140_v24 = vmul.f32 1.442695, %v1137_v22  ;;  %1511 = vmatprep.subr.bf16.mxu0 %v2437_v12  ;;  %v2466_v12 = vld [vmem:[#allocation13 + $0x68] sm:$0xff]  }
 0x365   : > { %v1133_v25 = vpop.xlane.xlu0 %1132 }
 0x366   : > { %2472 = vpow2.f32 %v1140_v24  ;;  %v1138_v26 = vsub.f32 %v1125_v16, %v1133_v25  ;;  %v2440_v24 = vld [vmem:[#allocation11 + $0x24] ss:$8 sps:$4 sm:$0xff]   ;;  %v2438_v25 = vld [vmem:[#allocation11 + $0x20] ss:$8 sps:$4 sm:$0xff]  }
 0x367   : > { %2474 = vpow2.f32 %v1144_v23  ;;  %1512 = vmatpush1.bf16.msra.mxu0 %v2435_v13  ;;  %v2467_v13 = vld [vmem:[#allocation13 + $0x28] sm:$0xff]  }
 0x368   : > { %v1142_v27 = vmul.f32 1.442695, %v1138_v26  ;;  %1513 = vmatprep.subr.bf16.mxu0 %v2440_v24  ;;  %v2443_v26 = vld [vmem:[#allocation11 + $0x34] ss:$8 sps:$4 sm:$0xff]  }
 0x36a   : > { %2476 = vpow2.f32 %v1142_v27  ;;  %v2441_v27 = vld [vmem:[#allocation11 + $0x30] ss:$8 sps:$4 sm:$0xff]  }
 0x36b   : > { %1514 = vmatpush1.bf16.msra.mxu0 %v2438_v25 }
 0x36c   : > { %1515 = vmatprep.subr.bf16.mxu0 %v2443_v26 }
 0x36f   : > { %1516 = vmatpush1.bf16.msra.mxu0 %v2441_v27 }
 0x370   : > { %v2473_v28 = vpop.eup %2472 }
 0x371   : > { %v1146_v29 = vsel %vm1127_vm1, %v2473_v28, 0.0  ;;  %v2475_v30 = vpop.eup %2474 }
 0x372   : > { %1147 = vadd.xlane.f32.xlu1 %v1146_v29  ;;  %v1152_v32 = vsel %vm1127_vm1, %v2475_v30, 0.0  ;;  %v2444_v29 = vld [vmem:[#allocation11 + $0x40] ss:$8 sps:$4 sm:$0xff]  }
 0x374   : > { %v2477_v31 = vpop.eup %2476 }
 0x375   : > { %v1149_v33 = vsel %vm1127_vm1, %v2477_v31, 0.0 }
 0x376   : > { %1153 = vadd.xlane.f32.xlu1 %v1152_v32  ;;  %1150 = vadd.xlane.f32.xlu0 %v1149_v33  ;;  %v2452_v32 = vld [vmem:[#allocation11 + $0x64] ss:$8 sps:$4 sm:$0xff]   ;;  %v2450_v33 = vld [vmem:[#allocation11 + $0x60] ss:$8 sps:$4 sm:$0xff]  }
 0x3ff   : > { %v1148_v35 = vpop.xlane.xlu1 %1147 }
 0x400   : > { %2478 = vrcp.f32 %v1148_v35  ;;  %v2453_v35 = vld [vmem:[#allocation11 + $0x70] ss:$8 sps:$4 sm:$0xff]  }
 0x403   : > { %v1154_v36 = vpop.xlane.xlu1 %1153  ;;  %v1151_v37 = vpop.xlane.xlu0 %1150 }
 0x404   : > { %2480 = vrcp.f32 %v1154_v36  ;;  %v2797_v36 = vmov 0  }
 0x405   : > { %2482 = vrcp.f32 %v1151_v37  ;;  %1541 = vmatprep.mubr.bf16.mxu0 %v2797_v36 }
 0x40a   : > { %v2479_v38 = vpop.eup %2478 }
 0x40b   : > { %v1156_v42 = vmul.f32 %v2479_v38, %v2473_v28  ;;  %v2446_v28 = vld [vmem:[#allocation11 + $0x44] ss:$8 sps:$4 sm:$0xff]  }
 0x40c   : > { %1517 = vmatprep.subr.bf16.mxu0 %v2446_v28 }
 0x40d   : > { %1518 = vmatpush1.bf16.msra.mxu0 %v2444_v29 }
 0x40e   : > { %v2481_v39 = vpop.eup %2480 }
 0x40f   : > { %v2483_v40 = vpop.eup %2482  ;;  %v1160_v41 = vmul.f32 %v2481_v39, %v2475_v30  ;;  %v2449_v30 = vld [vmem:[#allocation11 + $0x54] ss:$8 sps:$4 sm:$0xff]  }
 0x410   : > { %v1158_v43 = vmul.f32 %v2483_v40, %v2477_v31  ;;  %v2447_v31 = vld [vmem:[#allocation11 + $0x50] ss:$8 sps:$4 sm:$0xff]   ;;  %1519 = vmatprep.subr.bf16.mxu0 %v2449_v30 }
 0x411   : > { %v1162_v44 = vpack.c.bf16 %v1160_v41, %v1160_v41  ;;  %1520 = vmatpush1.bf16.msra.mxu0 %v2447_v31 }
 0x412   : > { %v1161_v45 = vpack.c.bf16 %v1158_v43, %v1156_v42  ;;  %1521 = vmatprep.subr.bf16.mxu0 %v2452_v32 }
 0x414   : > { %2257 = vmatprep.mubr.msk.bf16.mxu1 %vm1127_vm1, %v1161_v45 }
 0x415   : > { %2258 = vmatmul.mubr.msk.bf16.vlgmr.msra.gmra.mrb[4].mxu1 %vm1127_vm1, %v1162_v44  ;;  %1522 = vmatpush1.bf16.msra.mxu0 %v2450_v33 }
 0x416   : > { %2262 = vmatpush3.bf16.msra.mxu1 %v2424_v34  ;;  %v2455_v34 = vld [vmem:[#allocation11 + $0x74] ss:$8 sps:$4 sm:$0xff]  }
 0x417   : > { %2263 = vmatprep.subr.bf16.mxu1 %v2425_v46  ;;  %1523 = vmatprep.subr.bf16.mxu0 %v2455_v34 }
 0x419   : > { %1524 = vmatpush1.bf16.msra.mxu0 %v2453_v35 }
 0x41a   : > { %2264 = vmatpush3.bf16.msra.mxu1 %v2425_v46 }
 0x41b   : > { %2265 = vmatprep.subr.bf16.mxu1 %v2426_v47 }
 0x41e   : > { %2266 = vmatpush3.bf16.msra.mxu1 %v2426_v47  ;;  %v2069_v47 = vld [vmem:[%s3392_s0] ss:$0 sm:$0xff] }
 0x41f   : > { %2267 = vmatprep.subr.bf16.mxu1 %v2427_v48 }
 0x422   : > { %2268 = vmatpush3.bf16.msra.mxu1 %v2427_v48 }
 0x423   : > { %2269 = vmatprep.subr.bf16.mxu1 %v2428_v49 }
 0x426   : > { %2270 = vmatpush3.bf16.msra.mxu1 %v2428_v49 }
 0x427   : > { %2271 = vmatprep.subr.bf16.mxu1 %v2429_v50 }
 0x42a   : > { %2272 = vmatpush3.bf16.msra.mxu1 %v2429_v50 }
 0x42b   : > { %2273 = vmatprep.subr.bf16.mxu1 %v2430_v51 }
 0x42e   : > { %2274 = vmatpush3.bf16.msra.mxu1 %v2430_v51 }
 0x42f   : > { %2275 = vmatprep.subr.bf16.mxu1 %v2431_v52 }
 0x432   : > { %2276 = vmatpush3.bf16.msra.mxu1 %v2431_v52 }
 0x4e8   : > { %v2259_v53 = vpop.f32.mrb[4].mxu1 }
 0x4e9   : > { %v1207_v54 = vpop.f32.mrb[5].mxu1  ;;  %v1222_v58 = vpack.c.bf16 %v2259_v53, %v2259_v53  ;;  %v2070_v53 = vld [vmem:[%s3393_s23] ss:$0 sm:$0xff]  ;;  %s691_s23 = scalar_lea.vmem [#allocation14], %s2284_s24  ;;  %s1861_s24 = scalar_lea.sflag [#allocation4], %s3166_s16 }
 0x4ea   : > { %v2260_v55 = vpop.f32.mrb[6].mxu1  ;;  %s1874_s3 = sshll.u32 %s691_s23, 4  ;;  %s3278_s3 = int_to_ptr.vmem [resolvable:$true] %s1874_s3 }
 0x4eb   : > { %v1210_v56 = vpop.f32.mrb[7].mxu1  ;;  %s2706_s20 = scalar_lea.vmem %s3278_s3, 384  ;;  %p2713_p0 = scmp.lt.s32.totalorder %s3278_s3, %s2711_s25 }
 0x4ec   : > { %v1221_v57 = vpack.c.bf16 %v1210_v56, %v1207_v54  ;;  %p2707_p9 = scmp.ne.s32.totalorder %s3278_s3, %s2706_s20 }
 0x4ee   : > { %2277 = vmatprep.mubr.bf16.mxu1 %v1221_v57  ;;  %p2708_p1 = pnand %p2707_p9, %p3399_p12 }
 0x4ef   : > { %2278 = vmatmul.mubr.bf16.vlgmr.msra.gmra.mrb[8].mxu1 %v1222_v58 }
 0x4f0   : > { %p2709_p13 = pneg %p2708_p1 }
 0x5c2   : > { %v2279_v60 = vpop.f32.mrb[8].mxu1 }
 0x5c3   : > { %v1328_v61 = vpop.f32.mrb[9].mxu1  ;;  %v1337_v3 = vadd.f32 %v2279_v60, %v2060_v59 }
 0x5c4   : > { %v1329_v62 = vadd.f32 %v2060_v59, %v1328_v61  ;;  %v2280_v0 = vpop.f32.mrb[10].mxu1 }
 0x5c5   : > { %v1331_v2 = vpop.f32.mrb[11].mxu1  ;;  %v1344_v7 = vadd.f32 %v1337_v3, %v3199_v18  ;;  %v2457_v0 = vld [vmem:[#allocation13] sm:$0xff]   ;;  %v2459_v3 = vld [vmem:[#allocation13 + $0x8] sm:$0xff]  }
 0x5c6   : > { %v1332_v4 = vadd.f32 %v2060_v59, %v1331_v2  ;;  %v1342_v5 = vadd.f32 %v1329_v62, %v3191_v9  ;;  %v2456_v62 = vld [vmem:[#allocation13 + $0x40] sm:$0xff]   ;;  %v2458_v2 = vld [vmem:[#allocation13 + $0x48] sm:$0xff]  }
 0x5c7   : > { %2157 = vmatprep.subr.bf16.mxu1 %v2456_v62 }
 0x5c8   : > { %1347 = vadd.xlane.f32.xlu0 %v1342_v5  ;;  %v1343_v6 = vadd.f32 %v1332_v4, %v3194_v10  ;;  %2158 = vmatpush3.bf16.msra.mxu1 %v2457_v0  ;;  %v2460_v4 = vld [vmem:[#allocation13 + $0x50] sm:$0xff]  }
 0x5c9   : > { %2159 = vmatprep.subr.bf16.mxu1 %v2458_v2 }
 0x5ca   : > { %1349 = vadd.xlane.f32.xlu1 %v1343_v6 }
 0x5cc   : > { %1351 = vadd.xlane.f32.xlu0 %v1344_v7  ;;  %2160 = vmatpush3.bf16.msra.mxu1 %v2459_v3 }
 0x5cd   : > { %2161 = vmatprep.subr.bf16.mxu1 %v2460_v4 }
 0x655   : > { %v1348_v14 = vpop.xlane.xlu0 %1347 }
 0x656   : > { %v1354_v15 = vmul.f32 0.0078125, %v1348_v14  ;;  %v2468_v14 = vld [vmem:[#allocation13 + $0x70] sm:$0xff]  }
 0x657   : > { %v1350_v16 = vpop.xlane.xlu1 %1349 }
 0x658   : > { %v1357_v17 = vsub.f32 %v1342_v5, %v1354_v15  ;;  %v1355_v9 = vmul.f32 0.0078125, %v1350_v16  ;;  %v2461_v5 = vld [vmem:[#allocation13 + $0x10] sm:$0xff]   ;;  %v2470_v16 = vld [vmem:[#allocation13 + $0x78] sm:$0xff]  }
 0x659   : > { %v1352_v19 = vpop.xlane.xlu0 %1351  ;;  %2162 = vmatpush3.bf16.msra.mxu1 %v2461_v5  ;;  %v2469_v15 = vld [vmem:[#allocation13 + $0x30] sm:$0xff]  }
 0x65a   : > { %v1358_v20 = vsub.f32 %v1343_v6, %v1355_v9  ;;  %v1356_v10 = vmul.f32 0.0078125, %v1352_v19  ;;  %v1360_v21 = vmul.f32 %v1357_v17, %v1357_v17  ;;  %v2462_v6 = vld [vmem:[#allocation13 + $0x58] sm:$0xff]   ;;  %v1417_v9 = vld [vmem:[%s3394_s19] sm:$0x3]  ;;  %v1425_v19 = vsub.s32 1, %v3217_v63 }
 0x65b   : > { %2163 = vmatprep.subr.bf16.mxu1 %v2462_v6 }
 0x65c   : > { %v1359_v22 = vsub.f32 %v1344_v7, %v1356_v10  ;;  %1363 = vadd.xlane.f32.xlu1 %v1360_v21  ;;  %v1361_v18 = vmul.f32 %v1358_v20, %v1358_v20  ;;  %v2463_v7 = vld [vmem:[#allocation13 + $0x18] sm:$0xff]   ;;  %v1426_v10 = vrot.slane %v1417_v9, %v1425_v19 }
 0x65d   : > { %2164 = vmatpush3.bf16.msra.mxu1 %v2463_v7 }
 0x65e   : > { %1365 = vadd.xlane.f32.xlu0 %v1361_v18  ;;  %v1362_v23 = vmul.f32 %v1359_v22, %v1359_v22  ;;  %2165 = vmatprep.subr.bf16.mxu1 %v2464_v8 }
 0x660   : > { %1367 = vadd.xlane.f32.xlu1 %v1362_v23 }
 0x661   : > { %2166 = vmatpush3.bf16.msra.mxu1 %v2465_v11 }
 0x662   : > { %2167 = vmatprep.subr.bf16.mxu1 %v2466_v12 }
 0x665   : > { %2168 = vmatpush3.bf16.msra.mxu1 %v2467_v13 }
 0x666   : > { %2169 = vmatprep.subr.bf16.mxu1 %v2468_v14 }
 0x669   : > { %2170 = vmatpush3.bf16.msra.mxu1 %v2469_v15 }
 0x66a   : > { %2171 = vmatprep.subr.bf16.mxu1 %v2470_v16 }
 0x6e9   : > { %v1364_v37 = vpop.xlane.xlu1 %1363 }
 0x6ea   : > { %v1369_v38 = vmul.f32 0.0078125, %v1364_v37 }
 0x6eb   : > { %v1366_v39 = vpop.xlane.xlu0 %1365 }
 0x6ec   : > { %v1372_v40 = vadd.f32 1e-12, %v1369_v38  ;;  %v1370_v41 = vmul.f32 0.0078125, %v1366_v39 }
 0x6ed   : > { %v1368_v42 = vpop.xlane.xlu1 %1367 }
 0x6ee   : > { %2484 = vrsqrt.f32 %v1372_v40  ;;  %v1373_v43 = vadd.f32 1e-12, %v1370_v41  ;;  %v1371_v44 = vmul.f32 0.0078125, %v1368_v42 }
 0x6f0   : > { %2486 = vrsqrt.f32 %v1373_v43  ;;  %v1374_v45 = vadd.f32 1e-12, %v1371_v44 }
 0x6f2   : > { %2488 = vrsqrt.f32 %v1374_v45 }
 0x6f8   : > { %v2485_v46 = vpop.eup %2484 }
 0x6f9   : > { %v1378_v48 = vmul.f32 %v2485_v46, %v1357_v17  ;;  %v2471_v17 = vld [vmem:[#allocation13 + $0x38] sm:$0xff]  }
 0x6fa   : > { %v2487_v49 = vpop.eup %2486  ;;  %2172 = vmatpush3.bf16.msra.mxu1 %v2471_v17 }
 0x6fb   : > { %v1379_v50 = vmul.f32 %v2487_v49, %v1358_v20  ;;  %v1387_v51 = vmul.f32 %v2069_v47, %v1378_v48  ;;  %v1422_v20 = vrot.slane %v1417_v9, %v1121_v1 }
 0x6fc   : > { %v2489_v52 = vpop.eup %2488 }
 0x6fd   : > { %v1388_v54 = vmul.f32 %v2069_v47, %v1379_v50  ;;  %v1380_v55 = vmul.f32 %v2489_v52, %v1359_v22  ;;  %v3242_v56 = vadd.f32 %v2070_v53, %v1387_v51 }
 0x6ff   : > { %v3244_v57 = vadd.f32 %v2070_v53, %v1388_v54  ;;  %v1389_v59 = vmul.f32 %v2069_v47, %v1380_v55 }
 0x701   : > { %v1399_v58 = vpack.c.bf16 %v3244_v57, %v3242_v56  ;;  %v3248_v60 = vadd.f32 %v2070_v53, %v1389_v59 }
 0x703   : > { %1542 = vmatmul.mubr.bf16.vlgmr.msra.gmra.mrb[12].mxu0 %v1399_v58  ;;  %v1400_v61 = vpack.c.bf16 %v3248_v60, %v3248_v60 }
 0x704   : > { %1551 = vmatprep.mubr.bf16.mxu0 %v2797_v36 }
 0x70b   : > { %1552 = vmatmul.mubr.bf16.gmra.mrb[16].mxu0 %v1400_v61 }
 0x7d6   : > { %v1543_v21 = vpop.f32.mrb[12].mxu0 }
 0x7d7   : > { %v1544_v22 = vadd.f32 %v1543_v21, %v1422_v20  ;;  %v1545_v18 = vpop.f32.mrb[13].mxu0 }
 0x7d8   : > { %v1546_v23 = vadd.f32 %v1545_v18, %v1426_v10  ;;  %v1547_v24 = vpop.f32.mrb[14].mxu0 }
 0x7d9   : > { %v1560_v25 = vmul.f32 %v1544_v22, %v1544_v22  ;;  %v1548_v26 = vadd.f32 %v1547_v24, %v1422_v20  ;;  %v1549_v27 = vpop.f32.mrb[15].mxu0 }
 0x7da   : > { %v1561_v28 = vmul.f32 %v1546_v23, %v1546_v23  ;;  %v1550_v29 = vadd.f32 %v1549_v27, %v1426_v10 }
 0x7db   : > { %v1566_v30 = vmul.f32 %v1560_v25, %v1544_v22  ;;  %v1562_v31 = vmul.f32 %v1548_v26, %v1548_v26 }
 0x7dc   : > { %v1567_v32 = vmul.f32 %v1561_v28, %v1546_v23  ;;  %v1563_v33 = vmul.f32 %v1550_v29, %v1550_v29 }
 0x7dd   : > { %v1572_v34 = vmul.f32 0.044715, %v1566_v30  ;;  %v1568_v35 = vmul.f32 %v1562_v31, %v1548_v26 }
 0x7de   : > { %v1573_v36 = vmul.f32 0.044715, %v1567_v32  ;;  %v1569_v63 = vmul.f32 %v1563_v33, %v1550_v29  ;;  %v1553_v1 = vpop.f32.mrb[16].mxu0 }
 0x7df   : > { %v1578_v37 = vadd.f32 %v1572_v34, %v1544_v22  ;;  %v1574_v38 = vmul.f32 0.044715, %v1568_v35  ;;  %v1554_v39 = vadd.f32 %v1553_v1, %v1422_v20  ;;  %v1555_v40 = vpop.f32.mrb[17].mxu0 }
 0x7e0   : > { %v1579_v41 = vadd.f32 %v1573_v36, %v1546_v23  ;;  %v1575_v42 = vmul.f32 0.044715, %v1569_v63  ;;  %v1556_v43 = vadd.f32 %v1555_v40, %v1426_v10  ;;  %v1557_v44 = vpop.f32.mrb[18].mxu0 }
 0x7e1   : > { %v1584_v45 = vmul.f32 0.7978846, %v1578_v37  ;;  %v1580_v46 = vadd.f32 %v1574_v38, %v1548_v26  ;;  %v1564_v47 = vmul.f32 %v1554_v39, %v1554_v39  ;;  %v1558_v48 = vpop.f32.mrb[19].mxu0 }
 0x7e2   : > { %v1585_v49 = vmul.f32 0.7978846, %v1579_v41  ;;  %v1581_v50 = vadd.f32 %v1575_v42, %v1550_v29  ;;  %v1565_v51 = vmul.f32 %v1556_v43, %v1556_v43 }
 0x7e3   : > { %2490 = vtanh.f32 %v1584_v45  ;;  %v1586_v52 = vmul.f32 0.7978846, %v1580_v46  ;;  %v1570_v53 = vmul.f32 %v1564_v47, %v1554_v39 }
 0x7e4   : > { %2492 = vtanh.f32 %v1585_v49  ;;  %v1587_v54 = vmul.f32 0.7978846, %v1581_v50  ;;  %v1571_v55 = vmul.f32 %v1565_v51, %v1556_v43 }
 0x7e5   : > { %2494 = vtanh.f32 %v1586_v52  ;;  %v1576_v58 = vmul.f32 0.044715, %v1570_v53 }
 0x7e6   : > { %2496 = vtanh.f32 %v1587_v54  ;;  %v1577_v59 = vmul.f32 0.044715, %v1571_v55 }
 0x7e7   : > { %v1582_v61 = vadd.f32 %v1576_v58, %v1554_v39 }
 0x7e8   : > { %v1583_v62 = vadd.f32 %v1577_v59, %v1556_v43 }
 0x7e9   : > { %v1588_v0 = vmul.f32 0.7978846, %v1582_v61 }
 0x7ea   : > { %v1589_v2 = vmul.f32 0.7978846, %v1583_v62 }
 0x7eb   : > { %2498 = vtanh.f32 %v1588_v0 }
 0x7ec   : > { %2500 = vtanh.f32 %v1589_v2 }
 0x7ed   : > { %v2491_v3 = vpop.eup %2490 }
 0x7ee   : > { %v2493_v4 = vpop.eup %2492  ;;  %v1596_v5 = vadd.f32 1.0, %v2491_v3 }
 0x7ef   : > { %v2495_v6 = vpop.eup %2494  ;;  %v1597_v7 = vadd.f32 1.0, %v2493_v4 }
 0x7f0   : > { %v2497_v8 = vpop.eup %2496  ;;  %v1602_v11 = vmul.f32 0.5, %v1596_v5  ;;  %v1598_v12 = vadd.f32 1.0, %v2495_v6 }
 0x7f1   : > { %v1599_v13 = vadd.f32 1.0, %v2497_v8  ;;  %v1603_v14 = vmul.f32 0.5, %v1597_v7  ;;  %v2104_v7 = vld [vmem:[%s3396_s4] ss:$0 sm:$0xff]  ;;  %s2712_s4 = scalar_lea.vmem %s2711_s25, 768 }
 0x7f2   : > { %v1604_v15 = vmul.f32 0.5, %v1598_v12  ;;  %v1608_v17 = vmul.f32 %v1602_v11, %v1544_v22  ;;  %v2105_v12 = vld [vmem:[%s3397_s17] ss:$0 sm:$0xff]  ;;  %p2714_p2 = scmp.lt.s32.totalorder %s2712_s4, %s2706_s20 }
 0x7f3   : > { %v1605_v16 = vmul.f32 0.5, %v1599_v13  ;;  %v1609_v20 = vmul.f32 %v1603_v14, %v1546_v23  ;;  %v2087_v23 = vld [vmem:[%s3395_s22] ss:$0 sm:$0xff]  ;;  %s3276_s22 = scalar_lea.hbm %s3398_s26, %s2285_s2 }
 0x7f4   : > { %v1610_v9 = vmul.f32 %v1604_v15, %v1548_v26  ;;  %p2715_p8 = por %p2714_p2, %p2713_p0 }
 0x7f5   : > { %v2499_v19 = vpop.eup %2498  ;;  %v1611_v10 = vmul.f32 %v1605_v16, %v1550_v29 }
 0x7f6   : > { %v2501_v21 = vpop.eup %2500  ;;  %v1614_v18 = vpack.c.bf16 %v1610_v9, %v1608_v17  ;;  %v1600_v24 = vadd.f32 1.0, %v2499_v19  ;;  %p2716_p4 = pnand %p2715_p8, %p2709_p13 }
 0x7f7   : > { %v1615_v25 = vpack.c.bf16 %v1611_v10, %v1609_v20  ;;  %v1601_v27 = vadd.f32 1.0, %v2501_v21 }
 0x7f8   : > { %v1606_v28 = vmul.f32 0.5, %v1600_v24 }
 0x7f9   : > { %1785 = vmatprep.mubr.bf16.mxu1 %v1615_v25  ;;  %v1607_v30 = vmul.f32 0.5, %v1601_v27 }
 0x7fa   : > { %1786 = vmatmul.mubr.bf16.vlgmr.msra.gmra.mrb[12].mxu1 %v1614_v18  ;;  %v1612_v32 = vmul.f32 %v1606_v28, %v1554_v39 }
 0x7fb   : > { %v1613_v31 = vmul.f32 %v1607_v30, %v1556_v43 }
 0x7fc   : > { %v1616_v34 = vpack.c.bf16 %v1612_v32, %v1612_v32 }
 0x7fd   : > { %v1617_v33 = vpack.c.bf16 %v1613_v31, %v1613_v31 }
 0x7ff   : > { %1793 = vmatprep.mubr.bf16.mxu1 %v1617_v33 }
 0x802   : > { %1794 = vmatmul.mubr.bf16.gmra.mrb[16].mxu1 %v1616_v34 }
 0x8cd   : > { %v2173_v22 = vpop.f32.mrb[12].mxu1 }
 0x8ce   : > { %v2174_v26 = vpop.f32.mrb[13].mxu1 }
 0x8cf   : > { %v2175_v29 = vadd.f32 %v2174_v26, %v2173_v22  ;;  %v2176_v35 = vpop.f32.mrb[14].mxu1 }
 0x8d0   : > { %v2177_v36 = vpop.f32.mrb[15].mxu1 }
 0x8d1   : > { %v1788_v63 = vadd.f32 %v2175_v29, %v2087_v23  ;;  %v2178_v1 = vadd.f32 %v2177_v36, %v2176_v35 }
 0x8d3   : > { %v1791_v37 = vadd.f32 %v2178_v1, %v2087_v23  ;;  %v1801_v38 = vadd.f32 %v1788_v63, %v3242_v56 }
 0x8d5   : > { %v2179_v40 = vpop.f32.mrb[16].mxu1  ;;  %1806 = vadd.xlane.f32.xlu0 %v1801_v38  ;;  %v1802_v39 = vadd.f32 %v1791_v37, %v3244_v57 }
 0x8d6   : > { %v2180_v41 = vpop.f32.mrb[17].mxu1 }
 0x8d7   : > { %v2181_v42 = vadd.f32 %v2180_v41, %v2179_v40  ;;  %v2182_v43 = vpop.f32.mrb[18].mxu1  ;;  %1808 = vadd.xlane.f32.xlu1 %v1802_v39 }
 0x8d8   : > { %v2183_v44 = vpop.f32.mrb[19].mxu1 }
 0x8d9   : > { %v1796_v45 = vadd.f32 %v2181_v42, %v2087_v23 }
 0x8db   : > { %v1803_v46 = vadd.f32 %v1796_v45, %v3248_v60 }
 0x8dd   : > { %1810 = vadd.xlane.f32.xlu0 %v1803_v46 }
 0x962   : > { %v1807_v47 = vpop.xlane.xlu0 %1806 }
 0x963   : > { %v1812_v48 = vmul.f32 0.0078125, %v1807_v47 }
 0x964   : > { %v1809_v49 = vpop.xlane.xlu1 %1808 }
 0x965   : > { %v1815_v50 = vsub.f32 %v1801_v38, %v1812_v48  ;;  %v1813_v51 = vmul.f32 0.0078125, %v1809_v49 }
 0x967   : > { %v1816_v52 = vsub.f32 %v1802_v39, %v1813_v51  ;;  %v1818_v56 = vmul.f32 %v1815_v50, %v1815_v50 }
 0x969   : > { %1821 = vadd.xlane.f32.xlu1 %v1818_v56  ;;  %v1819_v53 = vmul.f32 %v1816_v52, %v1816_v52 }
 0x96a   : > { %v1811_v54 = vpop.xlane.xlu0 %1810 }
 0x96b   : > { %v1814_v57 = vmul.f32 0.0078125, %v1811_v54  ;;  %1823 = vadd.xlane.f32.xlu0 %v1819_v53 }
 0x96d   : > { %v1817_v55 = vsub.f32 %v1803_v46, %v1814_v57 }
 0x96f   : > { %v1820_v58 = vmul.f32 %v1817_v55, %v1817_v55 }
 0x971   : > { %1825 = vadd.xlane.f32.xlu1 %v1820_v58 }
 0x9f6   : > { %v1822_v59 = vpop.xlane.xlu1 %1821 }
 0x9f7   : > { %v1827_v61 = vmul.f32 0.0078125, %v1822_v59 }
 0x9f8   : > { %v1824_v62 = vpop.xlane.xlu0 %1823 }
 0x9f9   : > { %v1830_v60 = vadd.f32 1e-12, %v1827_v61  ;;  %v1828_v0 = vmul.f32 0.0078125, %v1824_v62 }
 0x9fb   : > { %2502 = vrsqrt.f32 %v1830_v60  ;;  %v1831_v2 = vadd.f32 1e-12, %v1828_v0 }
 0x9fd   : > { %2504 = vrsqrt.f32 %v1831_v2 }
 0x9fe   : > { %v1826_v3 = vpop.xlane.xlu1 %1825 }
 0x9ff   : > { %v1829_v4 = vmul.f32 0.0078125, %v1826_v3 }
 0xa01   : > { %v1832_v5 = vadd.f32 1e-12, %v1829_v4 }
 0xa03   : > { %2506 = vrsqrt.f32 %v1832_v5 }
 0xa05   : > { %v2503_v6 = vpop.eup %2502 }
 0xa06   : > { %v1836_v8 = vmul.f32 %v2503_v6, %v1815_v50 }
 0xa07   : > { %v2505_v11 = vpop.eup %2504 }
 0xa08   : > { %v1845_v13 = vmul.f32 %v2104_v7, %v1836_v8  ;;  %v1837_v14 = vmul.f32 %v2505_v11, %v1816_v52 }
 0xa0a   : > { %v1854_v15 = vadd.f32 %v2105_v12, %v1845_v13  ;;  %v1846_v16 = vmul.f32 %v2104_v7, %v1837_v14 }
 0xa0c   : > { %v1855_v17 = vadd.f32 %v2105_v12, %v1846_v16  ;;  %1857 = vst [vmem:[%s691_s23] sm:$0xff] %v1854_v15 }
 0xa0d   : > { %v2507_v9 = vpop.eup %2506 }
 0xa0e   : > { %v1838_v19 = vmul.f32 %v2507_v9, %v1817_v55  ;;  %1858 = vst [vmem:[%s691_s23 + $0x8] sm:$0xff] %v1855_v17 }
 0xa10   : > { %v1847_v20 = vmul.f32 %v2104_v7, %v1838_v19 }
 0xa12   : > { %v1856_v10 = vadd.f32 %v2105_v12, %v1847_v20 }
 0xa14   : > { %1859 = vst [vmem:[%s691_s23 + $0x10] sm:$0xff] %v1856_v10 }
 0xa15   : > { %2719 = shalt.err (!%p2716_p4)
}
 0xa16   : > { %s2720_s0 = scalar_lea.hbm %s3276_s22, 384  ;;  %s2724_s23 = scalar_lea.hbm %s3398_s26, 768 }
 0xa17   : > { %p2721_p10 = scmp.ne.s32.totalorder %s3276_s22, %s2720_s0  ;;  %p2725_p6 = scmp.lt.u32.totalorder %s3276_s22, %s3398_s26 }
 0xa18   : > { %p2726_p7 = scmp.lt.u32.totalorder %s2724_s23, %s2720_s0  ;;  %p2728_p9 = scmp.lt.u32.totalorder %s2720_s0, %s3276_s22 }
 0xa19   : > { %p2722_p11 = pnand %p2721_p10, %p3399_p12 }
 0xa1a   : > { %p2727_p5 = por %p2726_p7, %p2725_p6 }
 0xa1b   : > { %p2723_p3 = pneg %p2722_p11 }
 0xa1c   : > { %p2729_p1 = por %p2728_p9, %p2727_p5 }
 0xa1e   : > { %p2730_p13 = pnand %p2729_p1, %p2723_p3 }
 0xa20   : > { %2733 = shalt.err (!%p2730_p13)
}
 0xa21   : > { %s2799_s9 = smov 128   ;;  %s2800_s20 = smov 8  }
 0xa22   : > { %2312 = dma.vmem_to_hbm [thread:$0]  (%p3399_p12), %s3278_s3, 384, %s3276_s22, %s1861_s24, %s2799_s9, %s2799_s9, %s2800_s20  }
 0xa23 PF: > { %s1889_s1 = sand.u32 1, %s2772_s27   ;;  %p3400_p0 = scmp.ne.s32.totalorder %s3378_s10, 0 }
 0xa24   : > { %p3401_p2 = scmp.ge.s32.totalorder %s2784_s30, 2  ;;  %s1890_s25 = scalar_lea.sflag [#allocation4], %s1889_s1 }
 0xa26   : > { %p2338_p8 = pnand %p3401_p2, %p3400_p0 }
 0xa28   : > { %2767 = dma.done.wait (!%p2338_p8), %s1890_s25, 384  }
 0xa29   : > { %2769 = vsyncadd (!%p2338_p8), %s1890_s25, 4294966912  ;;  %p34_p4 = scmp.ge.s32.totalorder %s3090_s21, 4   ;;  %s3402_s27 = smov %s2776_s28 }
 0xa2a   : > { %s3403_s28 = smov %s2780_s29  ;;  %s3404_s29 = smov %s3101_s13 }
 0xa2b   : > { %s3405_s30 = smov %s3090_s21  ;;  %36 = sbr.rel (!%p34_p4) target bundleno = 22 (0x16), region = 164 }
 0xa32   :  { %1895 = vsyncpa [#allocation3], 1 }
 0xa33   :  { %1897 = vsyncpa [#allocation3 + $0x1], 1 }
 0xa34   :  { %1898 = vsyncpa [#allocation6], 1 }
 0xa35   :  { %1899 = vsyncpa [#allocation9], 1 }
 0xa36   :  { %1900 = vsyncpa [#allocation12], 1 }
 0xa37   :  { %1901 = vsyncpa [#allocation4], 1 }
 0xa38   :  { %1903 = vsyncpa [#allocation4 + $0x1], 1 }

</bundles_post_ra>
